<compile_context>
chip_gen: v7x
topology: tpu7x:2x2x1
jax: 0.10.0
libtpu: 0.0.40
codegen_flags: <defaults>
</compile_context>

<pallas_src>
import functools

import jax
import jax.numpy as jnp
from jax.experimental import pallas as pl
from jax.experimental.pallas import tpu as pltpu

BN_EPS = 1e-5
LANE = 128      # lane width: pad K and Cout to multiples of this
TM_MAX = 512    # M-tile rows; (TM*K + K*C + TM*C)*2 buffers fits VMEM on all gens


def _round_up(x, m):
    return (x + m - 1) // m * m


# ---------------------------------------------------------------------------
# Pass 1: conv-as-matmul + per-channel sum / sum-of-squares accumulation.
#   grid = (Cout tiles [parallel], M tiles [arbitrary -> stats reduction])
# ---------------------------------------------------------------------------
def _conv_stats_kernel(p_ref, w_ref, y_ref, sum_ref, ssq_ref):
    m_idx = pl.program_id(1)

    @pl.when(m_idx == 0)
    def _init():
        sum_ref[...] = jnp.zeros_like(sum_ref)
        ssq_ref[...] = jnp.zeros_like(ssq_ref)

    # MXU matmul: bf16 operands, f32 accumulation.
    y = jnp.dot(p_ref[...], w_ref[...], preferred_element_type=jnp.float32)
    y_ref[...] = y

    sum_ref[...] += jnp.sum(y, axis=0, keepdims=True)        # (1, TC)
    ssq_ref[...] += jnp.sum(y * y, axis=0, keepdims=True)    # (1, TC)


# ---------------------------------------------------------------------------
# Pass 2: finalize BN stats and apply scale/shift + ReLU.
# ---------------------------------------------------------------------------
def _bn_relu_kernel(y_ref, sum_ref, ssq_ref, g_ref, b_ref, o_ref, *, inv_m):
    mean = sum_ref[...] * inv_m                               # (1, TC)
    var = jnp.maximum(ssq_ref[...] * inv_m - mean * mean, 0.0)  # biased var
    scale = g_ref[...] * jax.lax.rsqrt(var + BN_EPS)          # (1, TC)
    shift = b_ref[...] - mean * scale
    o_ref[...] = jnp.maximum(y_ref[...] * scale + shift, 0.0)


def conv_bn_relu_matmul(patches, w2d, gamma, beta):
    """patches: (M, K) f32, w2d: (K, Cout) f32 -> (M, Cout) f32 ReLU(BN(conv))."""
    M, K = patches.shape
    Cout = w2d.shape[1]

    K_pad = _round_up(K, LANE)
    C_pad = _round_up(Cout, LANE)
    TM = min(TM_MAX, _round_up(M, 8))
    M_pad = _round_up(M, TM)
    TC = LANE

    # Lane-dense, bf16 matmul operands. Zero padding contributes nothing to the
    # dot or the BN statistics (stats divide by the true M below).
    p = jnp.pad(patches, ((0, M_pad - M), (0, K_pad - K))).astype(jnp.bfloat16)
    w = jnp.pad(w2d, ((0, K_pad - K), (0, C_pad - Cout))).astype(jnp.bfloat16)
    g = jnp.pad(gamma.reshape(1, Cout), ((0, 0), (0, C_pad - Cout)))
    b = jnp.pad(beta.reshape(1, Cout), ((0, 0), (0, C_pad - Cout)))

    grid = (C_pad // TC, M_pad // TM)

    y_raw, ch_sum, ch_ssq = pl.pallas_call(
        _conv_stats_kernel,
        out_shape=(jax.ShapeDtypeStruct((M_pad, C_pad), jnp.float32),
                   jax.ShapeDtypeStruct((1, C_pad), jnp.float32),
                   jax.ShapeDtypeStruct((1, C_pad), jnp.float32)),
        grid=grid,
        in_specs=[
            pl.BlockSpec((TM, K_pad), lambda c, m: (m, 0)),
            pl.BlockSpec((K_pad, TC), lambda c, m: (0, c)),
        ],
        out_specs=(
            pl.BlockSpec((TM, TC), lambda c, m: (m, c)),
            pl.BlockSpec((1, TC), lambda c, m: (0, c)),   # resident accumulators
            pl.BlockSpec((1, TC), lambda c, m: (0, c)),
        ),
        compiler_params=pltpu.CompilerParams(
            dimension_semantics=("parallel", "arbitrary")),
        cost_estimate=pl.CostEstimate(
            flops=2 * M_pad * K_pad * C_pad,
            transcendentals=0,
            bytes_accessed=(M_pad * K_pad * 2 + K_pad * C_pad * 2
                            + M_pad * C_pad * 4 + 2 * C_pad * 4)),
    )(p, w)

    out = pl.pallas_call(
        functools.partial(_bn_relu_kernel, inv_m=1.0 / float(M)),
        out_shape=jax.ShapeDtypeStruct((M_pad, C_pad), jnp.float32),
        grid=grid,
        in_specs=[
            pl.BlockSpec((TM, TC), lambda c, m: (m, c)),
            pl.BlockSpec((1, TC), lambda c, m: (0, c)),
            pl.BlockSpec((1, TC), lambda c, m: (0, c)),
            pl.BlockSpec((1, TC), lambda c, m: (0, c)),
            pl.BlockSpec((1, TC), lambda c, m: (0, c)),
        ],
        out_specs=pl.BlockSpec((TM, TC), lambda c, m: (m, c)),
        compiler_params=pltpu.CompilerParams(
            dimension_semantics=("parallel", "parallel")),
        cost_estimate=pl.CostEstimate(
            flops=3 * M_pad * C_pad,
            transcendentals=C_pad,
            bytes_accessed=2 * M_pad * C_pad * 4),
    )(y_raw, ch_sum, ch_ssq, g, b)

    return out[:M, :Cout]


def _im2col(x_nhwc, k, stride, pad):
    """(N, H, W, C) -> patches (N*Ho*Wo, k*k*C) with (kh, kw, cin) column order."""
    x = jnp.pad(x_nhwc, ((0, 0), (pad, pad), (pad, pad), (0, 0)))
    N, Hp, Wp, C = x.shape
    Ho = (Hp - k) // stride + 1
    Wo = (Wp - k) // stride + 1
    cols = []
    for kh in range(k):
        for kw in range(k):
            cols.append(
                x[:, kh:kh + Ho * stride:stride, kw:kw + Wo * stride:stride, :])
    patches = jnp.concatenate(cols, axis=-1)              # (N, Ho, Wo, k*k*C)
    return patches.reshape(N * Ho * Wo, k * k * C), (N, Ho, Wo)


def init_conv_layer_params(key, conv_cfg):
    """Mimics the module's init: Conv2d kaiming_normal_(relu), conv bias
    ~ U(-1/sqrt(fan_in), +) (unused at runtime: cancelled by BN), BN gamma=1, beta=0."""
    params = []
    for cfg in conv_cfg:
        cin, cout, k, stride, pad = cfg
        key, kw_, kb_ = jax.random.split(key, 3)
        fan_in = cin * k * k
        std = (2.0 / fan_in) ** 0.5
        w = std * jax.random.normal(kw_, (cout, cin, k, k), dtype=jnp.float32)
        bound = 1.0 / (fan_in ** 0.5)
        bias = jax.random.uniform(kb_, (cout,), minval=-bound, maxval=bound,
                                  dtype=jnp.float32)
        params.append(dict(w=w, b=bias,
                           gamma=jnp.ones((cout,), jnp.float32),
                           beta=jnp.zeros((cout,), jnp.float32),
                           k=k, stride=stride, pad=pad, cout=cout))
    return params


def conv_layer_forward(params, x_nchw):
    """Matches ConvLayer.forward: sequential Conv2d->BatchNorm2d(train stats)->ReLU.
    Input/output are NCHW float32 like PyTorch."""
    x = jnp.transpose(x_nchw, (0, 2, 3, 1)).astype(jnp.float32)   # NCHW -> NHWC
    for prm in params:
        k, stride, pad, cout = prm["k"], prm["stride"], prm["pad"], prm["cout"]
        cin = prm["w"].shape[1]
        patches, (N, Ho, Wo) = _im2col(x, k, stride, pad)
        # (Cout, Cin, KH, KW) -> (KH, KW, Cin, Cout) -> (k*k*Cin, Cout)
        w2d = jnp.transpose(prm["w"], (2, 3, 1, 0)).reshape(k * k * cin, cout)
        # Conv bias omitted: exactly cancelled by BN mean subtraction.
        y = conv_bn_relu_matmul(patches, w2d, prm["gamma"], prm["beta"])
        x = y.reshape(N, Ho, Wo, cout)
    return jnp.transpose(x, (0, 3, 1, 2))                         # NHWC -> NCHW


def _reference_forward(params, x_nchw):
    """Pure-JAX f32 reference (Conv2d with bias -> train-mode BN -> ReLU)."""
    x = x_nchw.astype(jnp.float32)
    for prm in params:
        y = jax.lax.conv_general_dilated(
            x, prm["w"], window_strides=(prm["stride"], prm["stride"]),
            padding=[(prm["pad"], prm["pad"])] * 2,
            dimension_numbers=("NCHW", "OIHW", "NCHW"))
        y = y + prm["b"].reshape(1, -1, 1, 1)
        mean = jnp.mean(y, axis=(0, 2, 3), keepdims=True)
        var = jnp.mean((y - mean) ** 2, axis=(0, 2, 3), keepdims=True)
        y = (y - mean) * jax.lax.rsqrt(var + BN_EPS)
        y = y * prm["gamma"].reshape(1, -1, 1, 1) + prm["beta"].reshape(1, -1, 1, 1)
        x = jnp.maximum(y, 0.0)
    return x


if __name__ == "__main__":
    # Conv_Cfg: [in_channels, out_channels, kernel_size, stride, padding]
    conv_cfg = [
        [4, 8, 3, 1, 1],
        [8, 16, 3, 2, 1],
    ]
    key = jax.random.PRNGKey(0)
    key, kx = jax.random.split(key)
    x = jax.random.normal(kx, (4, 4, 16, 16), dtype=jnp.float32)  # NCHW

    params = init_conv_layer_params(key, conv_cfg)

    fwd = jax.jit(lambda inp: conv_layer_forward(params, inp))
    out = jax.block_until_ready(fwd(x))

    expected_shape = (4, 16, 8, 8)  # stride-2 second layer halves spatial dims
    assert out.shape == expected_shape, (out.shape, expected_shape)
    assert bool(jnp.all(out >= 0.0)), "ReLU output must be non-negative"
    assert bool(jnp.all(jnp.isfinite(out))), "output must be finite"

    # Loose tolerance vs f32 reference (kernel matmul runs bf16 on the MXU).
    ref = jax.block_until_ready(_reference_forward(params, x))
    max_err = float(jnp.max(jnp.abs(out - ref)))
    mean_err = float(jnp.mean(jnp.abs(out - ref)))
    assert max_err < 0.5 and mean_err < 0.05, (max_err, mean_err)

    print("KERNEL_OK")
</pallas_src>

<mosaic_0001>
module attributes {stable_mosaic.version = 11 : i64} {
  func.func @_conv_stats_kernel(%arg0: i32, %arg1: i32, %arg2: memref<512x128xbf16, #tpu.memory_space<vmem>>, %arg3: memref<128x128xbf16, #tpu.memory_space<vmem>>, %arg4: memref<512x128xf32, #tpu.memory_space<vmem>>, %arg5: memref<1x128xf32, #tpu.memory_space<vmem>>, %arg6: memref<1x128xf32, #tpu.memory_space<vmem>>) attributes {dimension_semantics = [#tpu.dimension_semantics<parallel>, #tpu.dimension_semantics<arbitrary>], iteration_bounds = array<i64: 1, 2>, scalar_prefetch = 0 : i64, scratch_operands = 0 : i64, tpu.core_type = #tpu.core_type<tc>, window_params = [{transform_indices = @transform_0, window_bounds = array<i64: 512, 128>}, {transform_indices = @transform_1, window_bounds = array<i64: 128, 128>}, {transform_indices = @transform_2, window_bounds = array<i64: 512, 128>}, {transform_indices = @transform_3, window_bounds = array<i64: 1, 128>}, {transform_indices = @transform_4, window_bounds = array<i64: 1, 128>}]} {
    %c0_i32 = arith.constant 0 : i32
    %0 = arith.cmpi eq, %arg1, %c0_i32 : i32
    %1 = arith.extui %0 : i1 to i32
    %c0_i32_0 = arith.constant 0 : i32
    %2 = arith.cmpi ne, %1, %c0_i32_0 : i32
    scf.if %2 {
      %cst_16 = arith.constant 0.000000e+00 : f32
      %18 = vector.broadcast %cst_16 : f32 to vector<1x128xf32>
      %c0_17 = arith.constant 0 : index
      %c0_18 = arith.constant 0 : index
      %19 = vector.load %arg5[%c0_17, %c0_18] : memref<1x128xf32, #tpu.memory_space<vmem>>, vector<1x128xf32>
      tpu.vector_store %arg5[%c0_17, %c0_18], %18 {strides = array<i32>} : memref<1x128xf32, #tpu.memory_space<vmem>>, vector<1x128xf32>,
      %cst_19 = arith.constant 0.000000e+00 : f32
      %20 = vector.broadcast %cst_19 : f32 to vector<1x128xf32>
      %c0_20 = arith.constant 0 : index
      %c0_21 = arith.constant 0 : index
      %21 = vector.load %arg6[%c0_20, %c0_21] : memref<1x128xf32, #tpu.memory_space<vmem>>, vector<1x128xf32>
      tpu.vector_store %arg6[%c0_20, %c0_21], %20 {strides = array<i32>} : memref<1x128xf32, #tpu.memory_space<vmem>>, vector<1x128xf32>,
    } else {
    }
    %c0 = arith.constant 0 : index
    %c0_1 = arith.constant 0 : index
    %3 = vector.load %arg2[%c0, %c0_1] : memref<512x128xbf16, #tpu.memory_space<vmem>>, vector<512x128xbf16>
    %c0_2 = arith.constant 0 : index
    %c0_3 = arith.constant 0 : index
    %4 = vector.load %arg3[%c0_2, %c0_3] : memref<128x128xbf16, #tpu.memory_space<vmem>>, vector<128x128xbf16>
    %cst = arith.constant dense<0.000000e+00> : vector<512x128xf32>
    %5 = tpu.matmul %3, %4, %cst {dimension_numbers = #tpu.dot_dimension_numbers<[1], [0], [0], [1], [0, 0, 1, 1], [], []>} : vector<512x128xbf16>, vector<128x128xbf16>, vector<512x128xf32> -> vector<512x128xf32>
    %c0_4 = arith.constant 0 : index
    %c0_5 = arith.constant 0 : index
    %6 = vector.load %arg4[%c0_4, %c0_5] : memref<512x128xf32, #tpu.memory_space<vmem>>, vector<512x128xf32>
    tpu.vector_store %arg4[%c0_4, %c0_5], %5 {strides = array<i32>} : memref<512x128xf32, #tpu.memory_space<vmem>>, vector<512x128xf32>,
    %c0_6 = arith.constant 0 : index
    %c0_7 = arith.constant 0 : index
    %7 = vector.load %arg5[%c0_6, %c0_7] : memref<1x128xf32, #tpu.memory_space<vmem>>, vector<1x128xf32>
    %cst_8 = arith.constant dense<0.000000e+00> : vector<128xf32>
    %8 = vector.multi_reduction <add>, %5, %cst_8 [0] : vector<512x128xf32> to vector<128xf32>
    %9 = vector.shape_cast %8 : vector<128xf32> to vector<1x128xf32>
    %10 = arith.addf %7, %9 : vector<1x128xf32>
    %c0_9 = arith.constant 0 : index
    %c0_10 = arith.constant 0 : index
    %11 = vector.load %arg5[%c0_9, %c0_10] : memref<1x128xf32, #tpu.memory_space<vmem>>, vector<1x128xf32>
    tpu.vector_store %arg5[%c0_9, %c0_10], %10 {strides = array<i32>} : memref<1x128xf32, #tpu.memory_space<vmem>>, vector<1x128xf32>,
    %c0_11 = arith.constant 0 : index
    %c0_12 = arith.constant 0 : index
    %12 = vector.load %arg6[%c0_11, %c0_12] : memref<1x128xf32, #tpu.memory_space<vmem>>, vector<1x128xf32>
    %13 = arith.mulf %5, %5 : vector<512x128xf32>
    %cst_13 = arith.constant dense<0.000000e+00> : vector<128xf32>
    %14 = vector.multi_reduction <add>, %13, %cst_13 [0] : vector<512x128xf32> to vector<128xf32>
    %15 = vector.shape_cast %14 : vector<128xf32> to vector<1x128xf32>
    %16 = arith.addf %12, %15 : vector<1x128xf32>
    %c0_14 = arith.constant 0 : index
    %c0_15 = arith.constant 0 : index
    %17 = vector.load %arg6[%c0_14, %c0_15] : memref<1x128xf32, #tpu.memory_space<vmem>>, vector<1x128xf32>
    tpu.vector_store %arg6[%c0_14, %c0_15], %16 {strides = array<i32>} : memref<1x128xf32, #tpu.memory_space<vmem>>, vector<1x128xf32>,
    return
  }
  func.func @transform_0(%arg0: i32, %arg1: i32) -> (i32, i32) {
    %c0_i32 = arith.constant 0 : i32
    %c0_i32_0 = arith.constant 0 : i32
    return %arg1, %c0_i32 : i32, i32
  }
  func.func @transform_1(%arg0: i32, %arg1: i32) -> (i32, i32) {
    %c0_i32 = arith.constant 0 : i32
    %c0_i32_0 = arith.constant 0 : i32
    return %c0_i32, %arg0 : i32, i32
  }
  func.func @transform_2(%arg0: i32, %arg1: i32) -> (i32, i32) {
    %c0_i32 = arith.constant 0 : i32
    return %arg1, %arg0 : i32, i32
  }
  func.func @transform_3(%arg0: i32, %arg1: i32) -> (i32, i32) {
    %c0_i32 = arith.constant 0 : i32
    %c0_i32_0 = arith.constant 0 : i32
    return %c0_i32, %arg0 : i32, i32
  }
  func.func @transform_4(%arg0: i32, %arg1: i32) -> (i32, i32) {
    %c0_i32 = arith.constant 0 : i32
    %c0_i32_0 = arith.constant 0 : i32
    return %c0_i32, %arg0 : i32, i32
  }
}

module attributes {stable_mosaic.version = 11 : i64} {
  func.func @_bn_relu_kernel(%arg0: i32, %arg1: i32, %arg2: memref<512x128xf32, #tpu.memory_space<vmem>>, %arg3: memref<1x128xf32, #tpu.memory_space<vmem>>, %arg4: memref<1x128xf32, #tpu.memory_space<vmem>>, %arg5: memref<1x128xf32, #tpu.memory_space<vmem>>, %arg6: memref<1x128xf32, #tpu.memory_space<vmem>>, %arg7: memref<512x128xf32, #tpu.memory_space<vmem>>) attributes {dimension_semantics = [#tpu.dimension_semantics<parallel>, #tpu.dimension_semantics<parallel>], iteration_bounds = array<i64: 1, 2>, scalar_prefetch = 0 : i64, scratch_operands = 0 : i64, tpu.core_type = #tpu.core_type<tc>, window_params = [{transform_indices = @transform_0, window_bounds = array<i64: 512, 128>}, {transform_indices = @transform_1, window_bounds = array<i64: 1, 128>}, {transform_indices = @transform_2, window_bounds = array<i64: 1, 128>}, {transform_indices = @transform_3, window_bounds = array<i64: 1, 128>}, {transform_indices = @transform_4, window_bounds = array<i64: 1, 128>}, {transform_indices = @transform_5, window_bounds = array<i64: 512, 128>}]} {
    %c0 = arith.constant 0 : index
    %c0_0 = arith.constant 0 : index
    %0 = vector.load %arg3[%c0, %c0_0] : memref<1x128xf32, #tpu.memory_space<vmem>>, vector<1x128xf32>
    %cst = arith.constant 9.765625E-4 : f32
    %1 = vector.broadcast %cst : f32 to vector<1x128xf32>
    %2 = arith.mulf %0, %1 : vector<1x128xf32>
    %c0_1 = arith.constant 0 : index
    %c0_2 = arith.constant 0 : index
    %3 = vector.load %arg4[%c0_1, %c0_2] : memref<1x128xf32, #tpu.memory_space<vmem>>, vector<1x128xf32>
    %cst_3 = arith.constant 9.765625E-4 : f32
    %4 = vector.broadcast %cst_3 : f32 to vector<1x128xf32>
    %5 = arith.mulf %3, %4 : vector<1x128xf32>
    %6 = arith.mulf %2, %2 : vector<1x128xf32>
    %7 = arith.subf %5, %6 : vector<1x128xf32>
    %cst_4 = arith.constant 0.000000e+00 : f32
    %8 = vector.broadcast %cst_4 : f32 to vector<1x128xf32>
    %9 = arith.maximumf %7, %8 : vector<1x128xf32>
    %c0_5 = arith.constant 0 : index
    %c0_6 = arith.constant 0 : index
    %10 = vector.load %arg5[%c0_5, %c0_6] : memref<1x128xf32, #tpu.memory_space<vmem>>, vector<1x128xf32>
    %cst_7 = arith.constant 9.99999974E-6 : f32
    %11 = vector.broadcast %cst_7 : f32 to vector<1x128xf32>
    %12 = arith.addf %9, %11 : vector<1x128xf32>
    %13 = math.rsqrt %12 : vector<1x128xf32>
    %14 = arith.mulf %10, %13 : vector<1x128xf32>
    %c0_8 = arith.constant 0 : index
    %c0_9 = arith.constant 0 : index
    %15 = vector.load %arg6[%c0_8, %c0_9] : memref<1x128xf32, #tpu.memory_space<vmem>>, vector<1x128xf32>
    %16 = arith.mulf %2, %14 : vector<1x128xf32>
    %17 = arith.subf %15, %16 : vector<1x128xf32>
    %c0_10 = arith.constant 0 : index
    %c0_11 = arith.constant 0 : index
    %18 = vector.load %arg2[%c0_10, %c0_11] : memref<512x128xf32, #tpu.memory_space<vmem>>, vector<512x128xf32>
    %19 = vector.broadcast %14 : vector<1x128xf32> to vector<512x128xf32>
    %20 = arith.mulf %18, %19 : vector<512x128xf32>
    %21 = vector.broadcast %17 : vector<1x128xf32> to vector<512x128xf32>
    %22 = arith.addf %20, %21 : vector<512x128xf32>
    %cst_12 = arith.constant 0.000000e+00 : f32
    %23 = vector.broadcast %cst_12 : f32 to vector<512x128xf32>
    %24 = arith.maximumf %22, %23 : vector<512x128xf32>
    %c0_13 = arith.constant 0 : index
    %c0_14 = arith.constant 0 : index
    %25 = vector.load %arg7[%c0_13, %c0_14] : memref<512x128xf32, #tpu.memory_space<vmem>>, vector<512x128xf32>
    tpu.vector_store %arg7[%c0_13, %c0_14], %24 {strides = array<i32>} : memref<512x128xf32, #tpu.memory_space<vmem>>, vector<512x128xf32>,
    return
  }
  func.func @transform_0(%arg0: i32, %arg1: i32) -> (i32, i32) {
    %c0_i32 = arith.constant 0 : i32
    return %arg1, %arg0 : i32, i32
  }
  func.func @transform_1(%arg0: i32, %arg1: i32) -> (i32, i32) {
    %c0_i32 = arith.constant 0 : i32
    %c0_i32_0 = arith.constant 0 : i32
    return %c0_i32, %arg0 : i32, i32
  }
  func.func @transform_2(%arg0: i32, %arg1: i32) -> (i32, i32) {
    %c0_i32 = arith.constant 0 : i32
    %c0_i32_0 = arith.constant 0 : i32
    return %c0_i32, %arg0 : i32, i32
  }
  func.func @transform_3(%arg0: i32, %arg1: i32) -> (i32, i32) {
    %c0_i32 = arith.constant 0 : i32
    %c0_i32_0 = arith.constant 0 : i32
    return %c0_i32, %arg0 : i32, i32
  }
  func.func @transform_4(%arg0: i32, %arg1: i32) -> (i32, i32) {
    %c0_i32 = arith.constant 0 : i32
    %c0_i32_0 = arith.constant 0 : i32
    return %c0_i32, %arg0 : i32, i32
  }
  func.func @transform_5(%arg0: i32, %arg1: i32) -> (i32, i32) {
    %c0_i32 = arith.constant 0 : i32
    return %arg1, %arg0 : i32, i32
  }
}

module attributes {stable_mosaic.version = 11 : i64} {
  func.func @_conv_stats_kernel(%arg0: i32, %arg1: i32, %arg2: memref<256x128xbf16, #tpu.memory_space<vmem>>, %arg3: memref<128x128xbf16, #tpu.memory_space<vmem>>, %arg4: memref<256x128xf32, #tpu.memory_space<vmem>>, %arg5: memref<1x128xf32, #tpu.memory_space<vmem>>, %arg6: memref<1x128xf32, #tpu.memory_space<vmem>>) attributes {dimension_semantics = [#tpu.dimension_semantics<parallel>, #tpu.dimension_semantics<arbitrary>], iteration_bounds = array<i64: 1, 1>, scalar_prefetch = 0 : i64, scratch_operands = 0 : i64, tpu.core_type = #tpu.core_type<tc>, window_params = [{transform_indices = @transform_0, window_bounds = array<i64: 256, 128>}, {transform_indices = @transform_1, window_bounds = array<i64: 128, 128>}, {transform_indices = @transform_2, window_bounds = array<i64: 256, 128>}, {transform_indices = @transform_3, window_bounds = array<i64: 1, 128>}, {transform_indices = @transform_4, window_bounds = array<i64: 1, 128>}]} {
    %c0_i32 = arith.constant 0 : i32
    %0 = arith.cmpi eq, %arg1, %c0_i32 : i32
    %1 = arith.extui %0 : i1 to i32
    %c0_i32_0 = arith.constant 0 : i32
    %2 = arith.cmpi ne, %1, %c0_i32_0 : i32
    scf.if %2 {
      %cst_16 = arith.constant 0.000000e+00 : f32
      %18 = vector.broadcast %cst_16 : f32 to vector<1x128xf32>
      %c0_17 = arith.constant 0 : index
      %c0_18 = arith.constant 0 : index
      %19 = vector.load %arg5[%c0_17, %c0_18] : memref<1x128xf32, #tpu.memory_space<vmem>>, vector<1x128xf32>
      tpu.vector_store %arg5[%c0_17, %c0_18], %18 {strides = array<i32>} : memref<1x128xf32, #tpu.memory_space<vmem>>, vector<1x128xf32>,
      %cst_19 = arith.constant 0.000000e+00 : f32
      %20 = vector.broadcast %cst_19 : f32 to vector<1x128xf32>
      %c0_20 = arith.constant 0 : index
      %c0_21 = arith.constant 0 : index
      %21 = vector.load %arg6[%c0_20, %c0_21] : memref<1x128xf32, #tpu.memory_space<vmem>>, vector<1x128xf32>
      tpu.vector_store %arg6[%c0_20, %c0_21], %20 {strides = array<i32>} : memref<1x128xf32, #tpu.memory_space<vmem>>, vector<1x128xf32>,
    } else {
    }
    %c0 = arith.constant 0 : index
    %c0_1 = arith.constant 0 : index
    %3 = vector.load %arg2[%c0, %c0_1] : memref<256x128xbf16, #tpu.memory_space<vmem>>, vector<256x128xbf16>
    %c0_2 = arith.constant 0 : index
    %c0_3 = arith.constant 0 : index
    %4 = vector.load %arg3[%c0_2, %c0_3] : memref<128x128xbf16, #tpu.memory_space<vmem>>, vector<128x128xbf16>
    %cst = arith.constant dense<0.000000e+00> : vector<256x128xf32>
    %5 = tpu.matmul %3, %4, %cst {dimension_numbers = #tpu.dot_dimension_numbers<[1], [0], [0], [1], [0, 0, 1, 1], [], []>} : vector<256x128xbf16>, vector<128x128xbf16>, vector<256x128xf32> -> vector<256x128xf32>
    %c0_4 = arith.constant 0 : index
    %c0_5 = arith.constant 0 : index
    %6 = vector.load %arg4[%c0_4, %c0_5] : memref<256x128xf32, #tpu.memory_space<vmem>>, vector<256x128xf32>
    tpu.vector_store %arg4[%c0_4, %c0_5], %5 {strides = array<i32>} : memref<256x128xf32, #tpu.memory_space<vmem>>, vector<256x128xf32>,
    %c0_6 = arith.constant 0 : index
    %c0_7 = arith.constant 0 : index
    %7 = vector.load %arg5[%c0_6, %c0_7] : memref<1x128xf32, #tpu.memory_space<vmem>>, vector<1x128xf32>
    %cst_8 = arith.constant dense<0.000000e+00> : vector<128xf32>
    %8 = vector.multi_reduction <add>, %5, %cst_8 [0] : vector<256x128xf32> to vector<128xf32>
    %9 = vector.shape_cast %8 : vector<128xf32> to vector<1x128xf32>
    %10 = arith.addf %7, %9 : vector<1x128xf32>
    %c0_9 = arith.constant 0 : index
    %c0_10 = arith.constant 0 : index
    %11 = vector.load %arg5[%c0_9, %c0_10] : memref<1x128xf32, #tpu.memory_space<vmem>>, vector<1x128xf32>
    tpu.vector_store %arg5[%c0_9, %c0_10], %10 {strides = array<i32>} : memref<1x128xf32, #tpu.memory_space<vmem>>, vector<1x128xf32>,
    %c0_11 = arith.constant 0 : index
    %c0_12 = arith.constant 0 : index
    %12 = vector.load %arg6[%c0_11, %c0_12] : memref<1x128xf32, #tpu.memory_space<vmem>>, vector<1x128xf32>
    %13 = arith.mulf %5, %5 : vector<256x128xf32>
    %cst_13 = arith.constant dense<0.000000e+00> : vector<128xf32>
    %14 = vector.multi_reduction <add>, %13, %cst_13 [0] : vector<256x128xf32> to vector<128xf32>
    %15 = vector.shape_cast %14 : vector<128xf32> to vector<1x128xf32>
    %16 = arith.addf %12, %15 : vector<1x128xf32>
    %c0_14 = arith.constant 0 : index
    %c0_15 = arith.constant 0 : index
    %17 = vector.load %arg6[%c0_14, %c0_15] : memref<1x128xf32, #tpu.memory_space<vmem>>, vector<1x128xf32>
    tpu.vector_store %arg6[%c0_14, %c0_15], %16 {strides = array<i32>} : memref<1x128xf32, #tpu.memory_space<vmem>>, vector<1x128xf32>,
    return
  }
  func.func @transform_0(%arg0: i32, %arg1: i32) -> (i32, i32) {
    %c0_i32 = arith.constant 0 : i32
    %c0_i32_0 = arith.constant 0 : i32
    return %arg1, %c0_i32 : i32, i32
  }
  func.func @transform_1(%arg0: i32, %arg1: i32) -> (i32, i32) {
    %c0_i32 = arith.constant 0 : i32
    %c0_i32_0 = arith.constant 0 : i32
    return %c0_i32, %arg0 : i32, i32
  }
  func.func @transform_2(%arg0: i32, %arg1: i32) -> (i32, i32) {
    %c0_i32 = arith.constant 0 : i32
    return %arg1, %arg0 : i32, i32
  }
  func.func @transform_3(%arg0: i32, %arg1: i32) -> (i32, i32) {
    %c0_i32 = arith.constant 0 : i32
    %c0_i32_0 = arith.constant 0 : i32
    return %c0_i32, %arg0 : i32, i32
  }
  func.func @transform_4(%arg0: i32, %arg1: i32) -> (i32, i32) {
    %c0_i32 = arith.constant 0 : i32
    %c0_i32_0 = arith.constant 0 : i32
    return %c0_i32, %arg0 : i32, i32
  }
}

module attributes {stable_mosaic.version = 11 : i64} {
  func.func @_bn_relu_kernel(%arg0: i32, %arg1: i32, %arg2: memref<256x128xf32, #tpu.memory_space<vmem>>, %arg3: memref<1x128xf32, #tpu.memory_space<vmem>>, %arg4: memref<1x128xf32, #tpu.memory_space<vmem>>, %arg5: memref<1x128xf32, #tpu.memory_space<vmem>>, %arg6: memref<1x128xf32, #tpu.memory_space<vmem>>, %arg7: memref<256x128xf32, #tpu.memory_space<vmem>>) attributes {dimension_semantics = [#tpu.dimension_semantics<parallel>, #tpu.dimension_semantics<parallel>], iteration_bounds = array<i64: 1, 1>, scalar_prefetch = 0 : i64, scratch_operands = 0 : i64, tpu.core_type = #tpu.core_type<tc>, window_params = [{transform_indices = @transform_0, window_bounds = array<i64: 256, 128>}, {transform_indices = @transform_1, window_bounds = array<i64: 1, 128>}, {transform_indices = @transform_2, window_bounds = array<i64: 1, 128>}, {transform_indices = @transform_3, window_bounds = array<i64: 1, 128>}, {transform_indices = @transform_4, window_bounds = array<i64: 1, 128>}, {transform_indices = @transform_5, window_bounds = array<i64: 256, 128>}]} {
    %c0 = arith.constant 0 : index
    %c0_0 = arith.constant 0 : index
    %0 = vector.load %arg3[%c0, %c0_0] : memref<1x128xf32, #tpu.memory_space<vmem>>, vector<1x128xf32>
    %cst = arith.constant 3.906250e-03 : f32
    %1 = vector.broadcast %cst : f32 to vector<1x128xf32>
    %2 = arith.mulf %0, %1 : vector<1x128xf32>
    %c0_1 = arith.constant 0 : index
    %c0_2 = arith.constant 0 : index
    %3 = vector.load %arg4[%c0_1, %c0_2] : memref<1x128xf32, #tpu.memory_space<vmem>>, vector<1x128xf32>
    %cst_3 = arith.constant 3.906250e-03 : f32
    %4 = vector.broadcast %cst_3 : f32 to vector<1x128xf32>
    %5 = arith.mulf %3, %4 : vector<1x128xf32>
    %6 = arith.mulf %2, %2 : vector<1x128xf32>
    %7 = arith.subf %5, %6 : vector<1x128xf32>
    %cst_4 = arith.constant 0.000000e+00 : f32
    %8 = vector.broadcast %cst_4 : f32 to vector<1x128xf32>
    %9 = arith.maximumf %7, %8 : vector<1x128xf32>
    %c0_5 = arith.constant 0 : index
    %c0_6 = arith.constant 0 : index
    %10 = vector.load %arg5[%c0_5, %c0_6] : memref<1x128xf32, #tpu.memory_space<vmem>>, vector<1x128xf32>
    %cst_7 = arith.constant 9.99999974E-6 : f32
    %11 = vector.broadcast %cst_7 : f32 to vector<1x128xf32>
    %12 = arith.addf %9, %11 : vector<1x128xf32>
    %13 = math.rsqrt %12 : vector<1x128xf32>
    %14 = arith.mulf %10, %13 : vector<1x128xf32>
    %c0_8 = arith.constant 0 : index
    %c0_9 = arith.constant 0 : index
    %15 = vector.load %arg6[%c0_8, %c0_9] : memref<1x128xf32, #tpu.memory_space<vmem>>, vector<1x128xf32>
    %16 = arith.mulf %2, %14 : vector<1x128xf32>
    %17 = arith.subf %15, %16 : vector<1x128xf32>
    %c0_10 = arith.constant 0 : index
    %c0_11 = arith.constant 0 : index
    %18 = vector.load %arg2[%c0_10, %c0_11] : memref<256x128xf32, #tpu.memory_space<vmem>>, vector<256x128xf32>
    %19 = vector.broadcast %14 : vector<1x128xf32> to vector<256x128xf32>
    %20 = arith.mulf %18, %19 : vector<256x128xf32>
    %21 = vector.broadcast %17 : vector<1x128xf32> to vector<256x128xf32>
    %22 = arith.addf %20, %21 : vector<256x128xf32>
    %cst_12 = arith.constant 0.000000e+00 : f32
    %23 = vector.broadcast %cst_12 : f32 to vector<256x128xf32>
    %24 = arith.maximumf %22, %23 : vector<256x128xf32>
    %c0_13 = arith.constant 0 : index
    %c0_14 = arith.constant 0 : index
    %25 = vector.load %arg7[%c0_13, %c0_14] : memref<256x128xf32, #tpu.memory_space<vmem>>, vector<256x128xf32>
    tpu.vector_store %arg7[%c0_13, %c0_14], %24 {strides = array<i32>} : memref<256x128xf32, #tpu.memory_space<vmem>>, vector<256x128xf32>,
    return
  }
  func.func @transform_0(%arg0: i32, %arg1: i32) -> (i32, i32) {
    %c0_i32 = arith.constant 0 : i32
    return %arg1, %arg0 : i32, i32
  }
  func.func @transform_1(%arg0: i32, %arg1: i32) -> (i32, i32) {
    %c0_i32 = arith.constant 0 : i32
    %c0_i32_0 = arith.constant 0 : i32
    return %c0_i32, %arg0 : i32, i32
  }
  func.func @transform_2(%arg0: i32, %arg1: i32) -> (i32, i32) {
    %c0_i32 = arith.constant 0 : i32
    %c0_i32_0 = arith.constant 0 : i32
    return %c0_i32, %arg0 : i32, i32
  }
  func.func @transform_3(%arg0: i32, %arg1: i32) -> (i32, i32) {
    %c0_i32 = arith.constant 0 : i32
    %c0_i32_0 = arith.constant 0 : i32
    return %c0_i32, %arg0 : i32, i32
  }
  func.func @transform_4(%arg0: i32, %arg1: i32) -> (i32, i32) {
    %c0_i32 = arith.constant 0 : i32
    %c0_i32_0 = arith.constant 0 : i32
    return %c0_i32, %arg0 : i32, i32
  }
  func.func @transform_5(%arg0: i32, %arg1: i32) -> (i32, i32) {
    %c0_i32 = arith.constant 0 : i32
    return %arg1, %arg0 : i32, i32
  }
}

</mosaic_0001>

<bundles_post_ra>
// kernel: _lambda_.5
= control target key start
LH: loop header
LB: loop body
LE: loop exit
PB: predicated region body
PF: predicated region fallthrough
CT: control target
= control target key end

     0   :  { %s882_s18 = smov 0   ;;  %s884_s19 = smov 0   ;;  %s1198_s0 = inlined_call_operand.vmem [shape: f32[1024,128], index: 0, kind: input, shape index: {}]   ;;  %s1199_s1 = inlined_call_operand.vmem [shape: f32[1,128], index: 1, kind: input, shape index: {}]   ;;  %s1200_s2 = inlined_call_operand.vmem [shape: f32[1,128], index: 2, kind: input, shape index: {}]   ;;  %s1201_s3 = inlined_call_operand.vmem [shape: f32[1,128], index: 3, kind: input, shape index: {}]   ;;  %s1202_s4 = inlined_call_operand.vmem [shape: f32[1,128], index: 4, kind: input, shape index: {}]   ;;  %s1203_s5 = inlined_call_operand.vmem [shape: f32[1024,128], index: 5, kind: output, shape index: {}]  }
   0x1   :  { %s886_s20 = smov 0  }
   0x2 LB: > { %s24_s21 = sadd.s32 1, %s846_s19  ;;  %p795_p0 = scmp.ge.s32.totalorder %s850_s20, 1  ;;  %s850_s20 = sphi %s886_s20, %s15_s20   ;;  %s846_s19 = sphi %s884_s19, %s1205_s19   ;;  %s842_s18 = sphi %s882_s18, %s1204_s18  }
   0x3   : > { %p25_p1 = scmp.ge.s32.totalorder %s24_s21, 2  ;;  %p239_p2 = scmp.lt.s32.totalorder %s850_s20, 3 }
   0x5   : > { %s1207_s21 = smov (%p25_p1, %s24_s21), 0  ;;  %p240_p3 = pnand %p795_p0, %p239_p2 }
   0x6   : > { %v315_v0 = vld [vmem:[%s1199_s1] sm:$0x1] (!%p240_p3)  ;;  %s796_s26 = sshll.u32 (!%p240_p3), %s842_s18, 6  ;;  %v394_v8 = vlaneseq (!%p240_p3) }
   0x7   : > { %243 = sbr.rel (%p240_p3) target bundleno = 86 (0x56), region = 40  ;;  %v317_v1 = vld [vmem:[%s1200_s2] sm:$0x1] (!%p240_p3)  ;;  %v316_v2 = vmul.f32 (!%p240_p3), 0.0009765625, %v315_v0  ;;  %p286_p4 = scmp.lt.s32.totalorder (!%p240_p3), %s796_s26, 127 }
   0x8   : > { %v318_v3 = vmul.f32 (!%p240_p3), 0.0009765625, %v317_v1  ;;  %v395_v9 = vshrl.u32 (!%p240_p3), %v394_v8, 7  ;;  %v322_v10 = vld [vmem:[%s1201_s3] sm:$0x1] (!%p240_p3) }
   0x9   : > { %v319_v4 = vmul.f32 (!%p240_p3), %v316_v2, %v316_v2  ;;  %v326_v14 = vld [vmem:[%s1202_s4] sm:$0x1] (!%p240_p3) }
   0xa   : > { %v396_v11 = vsub.s32 (!%p240_p3), 0, %v395_v9 }
   0xb   : > { %v320_v5 = vsub.f32 (!%p240_p3), %v318_v3, %v319_v4 }
   0xd   : > { %v321_v6 = vmax.f32 (!%p240_p3), %v320_v5, 0.0 }
   0xe   : > { %s1209_s26 = smov (!%p286_p4, %s796_s26), 127 }
   0xf   : > { %v323_v7 = vadd.f32 1e-05, %v321_v6  ;;  %s797_s27 = sshll.u32 %s1209_s26, 3 }
  0x10   : > { %s914_s30 = scalar_lea.vmem %s1198_s0, %s797_s27  ;;  %s963_s12 = scalar_lea.vmem %s1203_s5, %s797_s27 }
  0x11   : > { %826 = vrsqrt.f32 %v323_v7  ;;  %v329_v15 = vld [vmem:[%s914_s30] sm:$0xff]  ;;  %v330_v16 = vld [vmem:[%s914_s30 + $0x8] sm:$0xff]  ;;  %v331_v17 = vld [vmem:[%s914_s30 + $0x10] sm:$0xff] }
  0x12   : > { %v332_v18 = vld [vmem:[%s914_s30 + $0x18] sm:$0xff]  ;;  %v333_v19 = vld [vmem:[%s914_s30 + $0x20] sm:$0xff]  ;;  %v334_v22 = vld [vmem:[%s914_s30 + $0x28] sm:$0xff] }
  0x13   : > { %v335_v23 = vld [vmem:[%s914_s30 + $0x30] sm:$0xff]  ;;  %v336_v24 = vld [vmem:[%s914_s30 + $0x38] sm:$0xff]  ;;  %v337_v25 = vld [vmem:[%s914_s30 + $0x40] sm:$0xff] }
  0x14   : > { %v338_v26 = vld [vmem:[%s914_s30 + $0x48] sm:$0xff]  ;;  %v339_v27 = vld [vmem:[%s914_s30 + $0x50] sm:$0xff]  ;;  %v340_v32 = vld [vmem:[%s914_s30 + $0x58] sm:$0xff] }
  0x15   : > { %v341_v33 = vld [vmem:[%s914_s30 + $0x60] sm:$0xff]  ;;  %v342_v34 = vld [vmem:[%s914_s30 + $0x68] sm:$0xff]  ;;  %v343_v59 = vld [vmem:[%s914_s30 + $0x70] sm:$0xff] }
  0x16   : > { %v344_v60 = vld [vmem:[%s914_s30 + $0x78] sm:$0xff]  ;;  %v345_v5 = vld [vmem:[%s914_s30 + $0x80] sm:$0xff] }
  0x1b   : > { %v827_v12 = vpop.eup %826 }
  0x1c   : > { %v325_v13 = vmul.f32 %v827_v12, %v322_v10  ;;  %v346_v10 = vld [vmem:[%s914_s30 + $0x88] sm:$0xff]  ;;  %v348_v12 = vld [vmem:[%s914_s30 + $0x98] sm:$0xff] }
  0x1e   : > { %v327_v20 = vmul.f32 %v325_v13, %v316_v2  ;;  %v927_v21 = vrot.slane %v325_v13, %v396_v11 }
  0x20   : > { %v328_v28 = vsub.f32 %v326_v14, %v327_v20  ;;  %v399_v29 = vmul.f32 %v927_v21, %v329_v15  ;;  %v400_v30 = vmul.f32 %v927_v21, %v330_v16  ;;  %v401_v31 = vmul.f32 %v927_v21, %v331_v17  ;;  %v349_v17 = vld [vmem:[%s914_s30 + $0xa0] sm:$0xff] }
  0x21   : > { %v402_v35 = vmul.f32 %v927_v21, %v332_v18  ;;  %v403_v36 = vmul.f32 %v927_v21, %v333_v19  ;;  %v404_v37 = vmul.f32 %v927_v21, %v334_v22  ;;  %v405_v38 = vmul.f32 %v927_v21, %v335_v23  ;;  %v350_v18 = vld [vmem:[%s914_s30 + $0xa8] sm:$0xff] }
  0x22   : > { %v945_v39 = vrot.slane %v328_v28, %v396_v11  ;;  %v406_v40 = vmul.f32 %v927_v21, %v336_v24  ;;  %v407_v41 = vmul.f32 %v927_v21, %v337_v25  ;;  %v408_v42 = vmul.f32 %v927_v21, %v338_v26  ;;  %v347_v11 = vld [vmem:[%s914_s30 + $0x90] sm:$0xff] }
  0x23   : > { %v409_v43 = vmul.f32 %v927_v21, %v339_v27  ;;  %v410_v44 = vmul.f32 %v927_v21, %v340_v32  ;;  %v411_v45 = vmul.f32 %v927_v21, %v341_v33  ;;  %v412_v46 = vmul.f32 %v927_v21, %v342_v34  ;;  %v351_v28 = vld [vmem:[%s914_s30 + $0xb0] sm:$0xff] }
  0x24   : > { %v469_v47 = vadd.f32 %v945_v39, %v399_v29  ;;  %v470_v48 = vadd.f32 %v945_v39, %v400_v30  ;;  %v471_v49 = vadd.f32 %v945_v39, %v401_v31  ;;  %v472_v50 = vadd.f32 %v945_v39, %v402_v35  ;;  %v352_v29 = vld [vmem:[%s914_s30 + $0xb8] sm:$0xff] }
  0x25   : > { %v473_v51 = vadd.f32 %v945_v39, %v403_v36  ;;  %v474_v52 = vadd.f32 %v945_v39, %v404_v37  ;;  %v475_v53 = vadd.f32 %v945_v39, %v405_v38  ;;  %v476_v54 = vadd.f32 %v945_v39, %v406_v40  ;;  %v353_v38 = vld [vmem:[%s914_s30 + $0xc0] sm:$0xff] }
  0x26   : > { %v533_v55 = vmax.f32 %v469_v47, 0.0  ;;  %v534_v56 = vmax.f32 %v470_v48, 0.0  ;;  %v535_v57 = vmax.f32 %v471_v49, 0.0  ;;  %v536_v58 = vmax.f32 %v472_v50, 0.0 }
  0x27   : > { %v537_v61 = vmax.f32 %v473_v51, 0.0  ;;  %v538_v62 = vmax.f32 %v474_v52, 0.0  ;;  %v539_v63 = vmax.f32 %v475_v53, 0.0  ;;  %v540_v0 = vmax.f32 %v476_v54, 0.0  ;;  %v357_v51 = vld [vmem:[%s914_s30 + $0xe0] sm:$0xff]  ;;  %v358_v52 = vld [vmem:[%s914_s30 + $0xe8] sm:$0xff] }
  0x28   : > { %597 = vst [vmem:[%s963_s12] sm:$0xff] %v533_v55  ;;  %598 = vst [vmem:[%s963_s12 + $0x8] sm:$0xff] %v534_v56  ;;  %v477_v1 = vadd.f32 %v945_v39, %v407_v41  ;;  %v478_v2 = vadd.f32 %v945_v39, %v408_v42  ;;  %v479_v3 = vadd.f32 %v945_v39, %v409_v43 }
  0x29   : > { %599 = vst [vmem:[%s963_s12 + $0x10] sm:$0xff] %v535_v57  ;;  %600 = vst [vmem:[%s963_s12 + $0x18] sm:$0xff] %v536_v58  ;;  %v480_v4 = vadd.f32 %v945_v39, %v410_v44  ;;  %v481_v6 = vadd.f32 %v945_v39, %v411_v45  ;;  %v482_v7 = vadd.f32 %v945_v39, %v412_v46  ;;  %v354_v44 = vld [vmem:[%s914_s30 + $0xc8] sm:$0xff]  ;;  %v355_v45 = vld [vmem:[%s914_s30 + $0xd0] sm:$0xff] }
  0x2a   : > { %601 = vst [vmem:[%s963_s12 + $0x20] sm:$0xff] %v537_v61  ;;  %602 = vst [vmem:[%s963_s12 + $0x28] sm:$0xff] %v538_v62  ;;  %v413_v8 = vmul.f32 %v927_v21, %v343_v59  ;;  %v414_v9 = vmul.f32 %v927_v21, %v344_v60  ;;  %v541_v13 = vmax.f32 %v477_v1, 0.0  ;;  %v542_v14 = vmax.f32 %v478_v2, 0.0  ;;  %v356_v46 = vld [vmem:[%s914_s30 + $0xd8] sm:$0xff]  ;;  %v359_v61 = vld [vmem:[%s914_s30 + $0xf0] sm:$0xff] }
  0x2b   : > { %603 = vst [vmem:[%s963_s12 + $0x30] sm:$0xff] %v539_v63  ;;  %604 = vst [vmem:[%s963_s12 + $0x38] sm:$0xff] %v540_v0  ;;  %v543_v15 = vmax.f32 %v479_v3, 0.0  ;;  %v544_v16 = vmax.f32 %v480_v4, 0.0  ;;  %v545_v19 = vmax.f32 %v481_v6, 0.0  ;;  %v546_v20 = vmax.f32 %v482_v7, 0.0 }
  0x2c   : > { %v483_v22 = vadd.f32 %v945_v39, %v413_v8  ;;  %v484_v23 = vadd.f32 %v945_v39, %v414_v9  ;;  %605 = vst [vmem:[%s963_s12 + $0x40] sm:$0xff] %v541_v13  ;;  %606 = vst [vmem:[%s963_s12 + $0x48] sm:$0xff] %v542_v14  ;;  %v415_v24 = vmul.f32 %v927_v21, %v345_v5  ;;  %v360_v62 = vld [vmem:[%s914_s30 + $0xf8] sm:$0xff]  ;;  %v361_v7 = vld [vmem:[%s914_s30 + $0x100] sm:$0xff] }
  0x2d   : > { %607 = vst [vmem:[%s963_s12 + $0x50] sm:$0xff] %v543_v15  ;;  %608 = vst [vmem:[%s963_s12 + $0x58] sm:$0xff] %v544_v16  ;;  %v416_v25 = vmul.f32 %v927_v21, %v346_v10  ;;  %v417_v26 = vmul.f32 %v927_v21, %v347_v11  ;;  %v418_v27 = vmul.f32 %v927_v21, %v348_v12  ;;  %v362_v12 = vld [vmem:[%s914_s30 + $0x108] sm:$0xff]  ;;  %v363_v13 = vld [vmem:[%s914_s30 + $0x110] sm:$0xff] }
  0x2e   : > { %609 = vst [vmem:[%s963_s12 + $0x60] sm:$0xff] %v545_v19  ;;  %610 = vst [vmem:[%s963_s12 + $0x68] sm:$0xff] %v546_v20  ;;  %v547_v30 = vmax.f32 %v483_v22, 0.0  ;;  %v548_v31 = vmax.f32 %v484_v23, 0.0  ;;  %v419_v32 = vmul.f32 %v927_v21, %v349_v17  ;;  %v420_v33 = vmul.f32 %v927_v21, %v350_v18  ;;  %v364_v14 = vld [vmem:[%s914_s30 + $0x118] sm:$0xff]  ;;  %v365_v19 = vld [vmem:[%s914_s30 + $0x120] sm:$0xff] }
  0x2f   : > { %v485_v34 = vadd.f32 %v945_v39, %v415_v24  ;;  %v486_v35 = vadd.f32 %v945_v39, %v416_v25  ;;  %v487_v36 = vadd.f32 %v945_v39, %v417_v26  ;;  %v488_v37 = vadd.f32 %v945_v39, %v418_v27  ;;  %v366_v20 = vld [vmem:[%s914_s30 + $0x128] sm:$0xff] }
  0x30   : > { %611 = vst [vmem:[%s963_s12 + $0x70] sm:$0xff] %v547_v30  ;;  %612 = vst [vmem:[%s963_s12 + $0x78] sm:$0xff] %v548_v31  ;;  %v489_v40 = vadd.f32 %v945_v39, %v419_v32  ;;  %v490_v41 = vadd.f32 %v945_v39, %v420_v33  ;;  %v421_v42 = vmul.f32 %v927_v21, %v351_v28  ;;  %v367_v30 = vld [vmem:[%s914_s30 + $0x130] sm:$0xff]  ;;  %v368_v31 = vld [vmem:[%s914_s30 + $0x138] sm:$0xff] }
  0x31   : > { %v422_v43 = vmul.f32 %v927_v21, %v352_v29  ;;  %v549_v47 = vmax.f32 %v485_v34, 0.0  ;;  %v550_v48 = vmax.f32 %v486_v35, 0.0  ;;  %v551_v49 = vmax.f32 %v487_v36, 0.0 }
  0x32   : > { %v552_v50 = vmax.f32 %v488_v37, 0.0  ;;  %v553_v53 = vmax.f32 %v489_v40, 0.0  ;;  %v554_v54 = vmax.f32 %v490_v41, 0.0  ;;  %v491_v55 = vadd.f32 %v945_v39, %v421_v42  ;;  %v369_v41 = vld [vmem:[%s914_s30 + $0x140] sm:$0xff] }
  0x33   : > { %v492_v56 = vadd.f32 %v945_v39, %v422_v43  ;;  %613 = vst [vmem:[%s963_s12 + $0x80] sm:$0xff] %v549_v47  ;;  %614 = vst [vmem:[%s963_s12 + $0x88] sm:$0xff] %v550_v48  ;;  %v423_v57 = vmul.f32 %v927_v21, %v353_v38  ;;  %v424_v58 = vmul.f32 %v927_v21, %v354_v44  ;;  %v371_v47 = vld [vmem:[%s914_s30 + $0x150] sm:$0xff]  ;;  %v372_v48 = vld [vmem:[%s914_s30 + $0x158] sm:$0xff] }
  0x34   : > { %615 = vst [vmem:[%s963_s12 + $0x90] sm:$0xff] %v551_v49  ;;  %616 = vst [vmem:[%s963_s12 + $0x98] sm:$0xff] %v552_v50  ;;  %v425_v59 = vmul.f32 %v927_v21, %v355_v45  ;;  %v426_v60 = vmul.f32 %v927_v21, %v356_v46  ;;  %v555_v63 = vmax.f32 %v491_v55, 0.0  ;;  %v427_v1 = vmul.f32 %v927_v21, %v357_v51  ;;  %v370_v46 = vld [vmem:[%s914_s30 + $0x148] sm:$0xff] }
  0x35   : > { %617 = vst [vmem:[%s963_s12 + $0xa0] sm:$0xff] %v553_v53  ;;  %618 = vst [vmem:[%s963_s12 + $0xa8] sm:$0xff] %v554_v54  ;;  %v556_v0 = vmax.f32 %v492_v56, 0.0  ;;  %v428_v2 = vmul.f32 %v927_v21, %v358_v52  ;;  %v493_v3 = vadd.f32 %v945_v39, %v423_v57  ;;  %v494_v4 = vadd.f32 %v945_v39, %v424_v58  ;;  %v373_v53 = vld [vmem:[%s914_s30 + $0x160] sm:$0xff]  ;;  %v374_v54 = vld [vmem:[%s914_s30 + $0x168] sm:$0xff] }
  0x36   : > { %v495_v5 = vadd.f32 %v945_v39, %v425_v59  ;;  %v496_v6 = vadd.f32 %v945_v39, %v426_v60  ;;  %619 = vst [vmem:[%s963_s12 + $0xb0] sm:$0xff] %v555_v63  ;;  %v497_v8 = vadd.f32 %v945_v39, %v427_v1  ;;  %v429_v10 = vmul.f32 %v927_v21, %v359_v61  ;;  %v375_v63 = vld [vmem:[%s914_s30 + $0x170] sm:$0xff] }
  0x37   : > { %620 = vst [vmem:[%s963_s12 + $0xb8] sm:$0xff] %v556_v0  ;;  %v498_v9 = vadd.f32 %v945_v39, %v428_v2  ;;  %v430_v11 = vmul.f32 %v927_v21, %v360_v62  ;;  %v557_v15 = vmax.f32 %v493_v3, 0.0  ;;  %v558_v16 = vmax.f32 %v494_v4, 0.0  ;;  %v376_v0 = vld [vmem:[%s914_s30 + $0x178] sm:$0xff] }
  0x38   : > { %v559_v17 = vmax.f32 %v495_v5, 0.0  ;;  %v560_v18 = vmax.f32 %v496_v6, 0.0  ;;  %v561_v22 = vmax.f32 %v497_v8, 0.0  ;;  %v499_v24 = vadd.f32 %v945_v39, %v429_v10 }
  0x39   : > { %v562_v23 = vmax.f32 %v498_v9, 0.0  ;;  %v500_v25 = vadd.f32 %v945_v39, %v430_v11  ;;  %621 = vst [vmem:[%s963_s12 + $0xc0] sm:$0xff] %v557_v15  ;;  %622 = vst [vmem:[%s963_s12 + $0xc8] sm:$0xff] %v558_v16  ;;  %v431_v26 = vmul.f32 %v927_v21, %v361_v7  ;;  %v432_v27 = vmul.f32 %v927_v21, %v362_v12  ;;  %v377_v9 = vld [vmem:[%s914_s30 + $0x180] sm:$0xff]  ;;  %v379_v15 = vld [vmem:[%s914_s30 + $0x190] sm:$0xff] }
  0x3a   : > { %623 = vst [vmem:[%s963_s12 + $0xd0] sm:$0xff] %v559_v17  ;;  %624 = vst [vmem:[%s963_s12 + $0xd8] sm:$0xff] %v560_v18  ;;  %v433_v28 = vmul.f32 %v927_v21, %v363_v13  ;;  %v434_v29 = vmul.f32 %v927_v21, %v364_v14  ;;  %v563_v32 = vmax.f32 %v499_v24, 0.0  ;;  %v435_v34 = vmul.f32 %v927_v21, %v365_v19  ;;  %v378_v14 = vld [vmem:[%s914_s30 + $0x188] sm:$0xff]  ;;  %v380_v16 = vld [vmem:[%s914_s30 + $0x198] sm:$0xff] }
  0x3b   : > { %625 = vst [vmem:[%s963_s12 + $0xe0] sm:$0xff] %v561_v22  ;;  %626 = vst [vmem:[%s963_s12 + $0xe8] sm:$0xff] %v562_v23  ;;  %v564_v33 = vmax.f32 %v500_v25, 0.0  ;;  %v436_v35 = vmul.f32 %v927_v21, %v366_v20  ;;  %v501_v36 = vadd.f32 %v945_v39, %v431_v26  ;;  %v502_v37 = vadd.f32 %v945_v39, %v432_v27  ;;  %v381_v22 = vld [vmem:[%s914_s30 + $0x1a0] sm:$0xff]  ;;  %v382_v23 = vld [vmem:[%s914_s30 + $0x1a8] sm:$0xff] }
  0x3c   : > { %v503_v38 = vadd.f32 %v945_v39, %v433_v28  ;;  %v504_v40 = vadd.f32 %v945_v39, %v434_v29  ;;  %627 = vst [vmem:[%s963_s12 + $0xf0] sm:$0xff] %v563_v32  ;;  %v505_v42 = vadd.f32 %v945_v39, %v435_v34  ;;  %v437_v44 = vmul.f32 %v927_v21, %v367_v30  ;;  %v383_v32 = vld [vmem:[%s914_s30 + $0x1b0] sm:$0xff] }
  0x3d   : > { %628 = vst [vmem:[%s963_s12 + $0xf8] sm:$0xff] %v564_v33  ;;  %v506_v43 = vadd.f32 %v945_v39, %v436_v35  ;;  %v438_v45 = vmul.f32 %v927_v21, %v368_v31  ;;  %v565_v49 = vmax.f32 %v501_v36, 0.0  ;;  %v566_v50 = vmax.f32 %v502_v37, 0.0  ;;  %v384_v33 = vld [vmem:[%s914_s30 + $0x1b8] sm:$0xff] }
  0x3e   : > { %v567_v51 = vmax.f32 %v503_v38, 0.0  ;;  %v568_v52 = vmax.f32 %v504_v40, 0.0  ;;  %v569_v55 = vmax.f32 %v505_v42, 0.0  ;;  %v507_v57 = vadd.f32 %v945_v39, %v437_v44 }
  0x3f   : > { %v570_v56 = vmax.f32 %v506_v43, 0.0  ;;  %v508_v58 = vadd.f32 %v945_v39, %v438_v45  ;;  %629 = vst [vmem:[%s963_s12 + $0x100] sm:$0xff] %v565_v49  ;;  %630 = vst [vmem:[%s963_s12 + $0x108] sm:$0xff] %v566_v50  ;;  %v439_v59 = vmul.f32 %v927_v21, %v369_v41  ;;  %v440_v60 = vmul.f32 %v927_v21, %v370_v46  ;;  %v385_v43 = vld [vmem:[%s914_s30 + $0x1c0] sm:$0xff]  ;;  %v387_v49 = vld [vmem:[%s914_s30 + $0x1d0] sm:$0xff] }
  0x40   : > { %631 = vst [vmem:[%s963_s12 + $0x110] sm:$0xff] %v567_v51  ;;  %632 = vst [vmem:[%s963_s12 + $0x118] sm:$0xff] %v568_v52  ;;  %v441_v61 = vmul.f32 %v927_v21, %v371_v47  ;;  %v442_v62 = vmul.f32 %v927_v21, %v372_v48  ;;  %v571_v1 = vmax.f32 %v507_v57, 0.0  ;;  %v443_v3 = vmul.f32 %v927_v21, %v373_v53  ;;  %v386_v48 = vld [vmem:[%s914_s30 + $0x1c8] sm:$0xff]  ;;  %v388_v50 = vld [vmem:[%s914_s30 + $0x1d8] sm:$0xff] }
  0x41   : > { %633 = vst [vmem:[%s963_s12 + $0x120] sm:$0xff] %v569_v55  ;;  %634 = vst [vmem:[%s963_s12 + $0x128] sm:$0xff] %v570_v56  ;;  %v572_v2 = vmax.f32 %v508_v58, 0.0  ;;  %v444_v4 = vmul.f32 %v927_v21, %v374_v54  ;;  %v509_v5 = vadd.f32 %v945_v39, %v439_v59  ;;  %v510_v6 = vadd.f32 %v945_v39, %v440_v60  ;;  %v389_v55 = vld [vmem:[%s914_s30 + $0x1e0] sm:$0xff]  ;;  %v390_v56 = vld [vmem:[%s914_s30 + $0x1e8] sm:$0xff] }
  0x42   : > { %v511_v7 = vadd.f32 %v945_v39, %v441_v61  ;;  %v512_v8 = vadd.f32 %v945_v39, %v442_v62  ;;  %635 = vst [vmem:[%s963_s12 + $0x130] sm:$0xff] %v571_v1  ;;  %v513_v10 = vadd.f32 %v945_v39, %v443_v3  ;;  %v445_v12 = vmul.f32 %v927_v21, %v375_v63  ;;  %v391_v1 = vld [vmem:[%s914_s30 + $0x1f0] sm:$0xff] }
  0x43   : > { %636 = vst [vmem:[%s963_s12 + $0x138] sm:$0xff] %v572_v2  ;;  %v514_v11 = vadd.f32 %v945_v39, %v444_v4  ;;  %v446_v13 = vmul.f32 %v927_v21, %v376_v0  ;;  %v573_v17 = vmax.f32 %v509_v5, 0.0  ;;  %v574_v18 = vmax.f32 %v510_v6, 0.0  ;;  %v392_v2 = vld [vmem:[%s914_s30 + $0x1f8] sm:$0xff] }
  0x44   : > { %v575_v19 = vmax.f32 %v511_v7, 0.0  ;;  %v576_v20 = vmax.f32 %v512_v8, 0.0  ;;  %v577_v24 = vmax.f32 %v513_v10, 0.0  ;;  %v515_v26 = vadd.f32 %v945_v39, %v445_v12 }
  0x45   : > { %v578_v25 = vmax.f32 %v514_v11, 0.0  ;;  %v516_v27 = vadd.f32 %v945_v39, %v446_v13  ;;  %637 = vst [vmem:[%s963_s12 + $0x140] sm:$0xff] %v573_v17  ;;  %638 = vst [vmem:[%s963_s12 + $0x148] sm:$0xff] %v574_v18  ;;  %v447_v28 = vmul.f32 %v927_v21, %v377_v9  ;;  %v448_v29 = vmul.f32 %v927_v21, %v378_v14 }
  0x46   : > { %639 = vst [vmem:[%s963_s12 + $0x150] sm:$0xff] %v575_v19  ;;  %640 = vst [vmem:[%s963_s12 + $0x158] sm:$0xff] %v576_v20  ;;  %v449_v30 = vmul.f32 %v927_v21, %v379_v15  ;;  %v450_v31 = vmul.f32 %v927_v21, %v380_v16  ;;  %v579_v34 = vmax.f32 %v515_v26, 0.0  ;;  %v451_v36 = vmul.f32 %v927_v21, %v381_v22 }
  0x47   : > { %641 = vst [vmem:[%s963_s12 + $0x160] sm:$0xff] %v577_v24  ;;  %642 = vst [vmem:[%s963_s12 + $0x168] sm:$0xff] %v578_v25  ;;  %v580_v35 = vmax.f32 %v516_v27, 0.0  ;;  %v452_v37 = vmul.f32 %v927_v21, %v382_v23  ;;  %v517_v38 = vadd.f32 %v945_v39, %v447_v28  ;;  %v518_v40 = vadd.f32 %v945_v39, %v448_v29 }
  0x48   : > { %v519_v41 = vadd.f32 %v945_v39, %v449_v30  ;;  %v520_v42 = vadd.f32 %v945_v39, %v450_v31  ;;  %643 = vst [vmem:[%s963_s12 + $0x170] sm:$0xff] %v579_v34  ;;  %v521_v44 = vadd.f32 %v945_v39, %v451_v36  ;;  %v453_v46 = vmul.f32 %v927_v21, %v383_v32 }
  0x49   : > { %644 = vst [vmem:[%s963_s12 + $0x178] sm:$0xff] %v580_v35  ;;  %v522_v45 = vadd.f32 %v945_v39, %v452_v37  ;;  %v454_v47 = vmul.f32 %v927_v21, %v384_v33  ;;  %v581_v51 = vmax.f32 %v517_v38, 0.0  ;;  %v582_v52 = vmax.f32 %v518_v40, 0.0 }
  0x4a   : > { %v583_v53 = vmax.f32 %v519_v41, 0.0  ;;  %v584_v54 = vmax.f32 %v520_v42, 0.0  ;;  %v585_v57 = vmax.f32 %v521_v44, 0.0  ;;  %v523_v59 = vadd.f32 %v945_v39, %v453_v46 }
  0x4b   : > { %v586_v58 = vmax.f32 %v522_v45, 0.0  ;;  %v524_v60 = vadd.f32 %v945_v39, %v454_v47  ;;  %645 = vst [vmem:[%s963_s12 + $0x180] sm:$0xff] %v581_v51  ;;  %646 = vst [vmem:[%s963_s12 + $0x188] sm:$0xff] %v582_v52  ;;  %v455_v61 = vmul.f32 %v927_v21, %v385_v43  ;;  %v456_v62 = vmul.f32 %v927_v21, %v386_v48 }
  0x4c   : > { %647 = vst [vmem:[%s963_s12 + $0x190] sm:$0xff] %v583_v53  ;;  %648 = vst [vmem:[%s963_s12 + $0x198] sm:$0xff] %v584_v54  ;;  %v457_v63 = vmul.f32 %v927_v21, %v387_v49  ;;  %v458_v0 = vmul.f32 %v927_v21, %v388_v50  ;;  %v587_v3 = vmax.f32 %v523_v59, 0.0  ;;  %v459_v5 = vmul.f32 %v927_v21, %v389_v55 }
  0x4d   : > { %649 = vst [vmem:[%s963_s12 + $0x1a0] sm:$0xff] %v585_v57  ;;  %650 = vst [vmem:[%s963_s12 + $0x1a8] sm:$0xff] %v586_v58  ;;  %v588_v4 = vmax.f32 %v524_v60, 0.0  ;;  %v460_v6 = vmul.f32 %v927_v21, %v390_v56  ;;  %v525_v7 = vadd.f32 %v945_v39, %v455_v61  ;;  %v526_v8 = vadd.f32 %v945_v39, %v456_v62 }
  0x4e   : > { %v527_v9 = vadd.f32 %v945_v39, %v457_v63  ;;  %v528_v10 = vadd.f32 %v945_v39, %v458_v0  ;;  %651 = vst [vmem:[%s963_s12 + $0x1b0] sm:$0xff] %v587_v3  ;;  %v529_v11 = vadd.f32 %v945_v39, %v459_v5  ;;  %v461_v13 = vmul.f32 %v927_v21, %v391_v1 }
  0x4f   : > { %652 = vst [vmem:[%s963_s12 + $0x1b8] sm:$0xff] %v588_v4  ;;  %v530_v12 = vadd.f32 %v945_v39, %v460_v6  ;;  %v462_v14 = vmul.f32 %v927_v21, %v392_v2  ;;  %v589_v15 = vmax.f32 %v525_v7, 0.0  ;;  %v590_v16 = vmax.f32 %v526_v8, 0.0 }
  0x50   : > { %v591_v17 = vmax.f32 %v527_v9, 0.0  ;;  %v592_v18 = vmax.f32 %v528_v10, 0.0  ;;  %v593_v19 = vmax.f32 %v529_v11, 0.0  ;;  %v531_v22 = vadd.f32 %v945_v39, %v461_v13 }
  0x51   : > { %v594_v20 = vmax.f32 %v530_v12, 0.0  ;;  %v532_v23 = vadd.f32 %v945_v39, %v462_v14  ;;  %653 = vst [vmem:[%s963_s12 + $0x1c0] sm:$0xff] %v589_v15  ;;  %654 = vst [vmem:[%s963_s12 + $0x1c8] sm:$0xff] %v590_v16 }
  0x52   : > { %655 = vst [vmem:[%s963_s12 + $0x1d0] sm:$0xff] %v591_v17  ;;  %656 = vst [vmem:[%s963_s12 + $0x1d8] sm:$0xff] %v592_v18  ;;  %v595_v24 = vmax.f32 %v531_v22, 0.0 }
  0x53   : > { %657 = vst [vmem:[%s963_s12 + $0x1e0] sm:$0xff] %v593_v19  ;;  %658 = vst [vmem:[%s963_s12 + $0x1e8] sm:$0xff] %v594_v20  ;;  %v596_v21 = vmax.f32 %v532_v23, 0.0 }
  0x54   : > { %659 = vst [vmem:[%s963_s12 + $0x1f0] sm:$0xff] %v595_v24 }
  0x55   : > { %660 = vst [vmem:[%s963_s12 + $0x1f8] sm:$0xff] %v596_v21 }
  0x56 PF: > { %s15_s20 = sadd.s32 1, %s850_s20   ;;  %s1204_s18 = smov %s846_s19 }
  0x57   : > { %p12_p5 = scmp.ge.s32.totalorder %s15_s20, 4   ;;  %s1205_s19 = smov %s1207_s21 }
  0x59   :  { %14 = sbr.rel (!%p12_p5) target bundleno = 2 (0x2), region = 82 }

// kernel: _lambda_.4
= control target key start
LH: loop header
LB: loop body
LE: loop exit
PB: predicated region body
PF: predicated region fallthrough
CT: control target
= control target key end

     0   :  { %s1583_s15 = smov 0   ;;  %s1585_s16 = smov 0   ;;  %s1950_s0 = inlined_call_operand.vmem [shape: bf16[1024,128], index: 0, kind: input, shape index: {}]   ;;  %s1951_s1 = inlined_call_operand.vmem [shape: bf16[128,128], index: 1, kind: input, shape index: {}]   ;;  %s1952_s2 = inlined_call_operand.vmem [shape: f32[1024,128], index: 2, kind: output, shape index: {0}]   ;;  %s1953_s3 = inlined_call_operand.vmem [shape: f32[1,128], index: 3, kind: output, shape index: {1}]   ;;  %s1954_s4 = inlined_call_operand.vmem [shape: f32[1,128], index: 4, kind: output, shape index: {2}]  }
   0x1   :  { %s1587_s17 = smov 0  }
   0x2 LB: > { %s24_s18 = sadd.s32 1, %s1551_s16  ;;  %p1282_p0 = scmp.ge.s32.totalorder %s1555_s17, 1  ;;  %s1555_s17 = sphi %s1587_s17, %s15_s17   ;;  %s1551_s16 = sphi %s1585_s16, %s1956_s16   ;;  %s1547_s15 = sphi %s1583_s15, %s1955_s15  }
   0x3   : > { %p25_p1 = scmp.ge.s32.totalorder %s24_s18, 2  ;;  %p191_p2 = scmp.lt.s32.totalorder %s1555_s17, 3 }
   0x5   : > { %s1958_s18 = smov (%p25_p1, %s24_s18), 0  ;;  %p192_p3 = pnand %p1282_p0, %p191_p2 }
   0x6   : > { %s1283_s19 = sshll.u32 (!%p192_p3), %s1547_s15, 6  ;;  %p1287_p5 = scmp.ne.s32.totalorder (!%p192_p3), %s1547_s15, 0 }
   0x7   : > { %195 = sbr.rel (%p192_p3) target bundleno = 412 (0x19c), region = 28  ;;  %p231_p4 = scmp.lt.s32.totalorder (!%p192_p3), %s1283_s19, 127 }
   0xe   : > { %s1960_s19 = smov (!%p231_p4, %s1283_s19), 127  ;;  %259 = sbr.rel (%p1287_p5) target bundleno = 21 (0x15), region = 32 }
   0xf   : > { %s1284_s20 = sshll.u32 %s1960_s19, 2  ;;  %s1286_s21 = sshll.u32 %s1960_s19, 3  ;;  %v1557_v0 = vmov (!%p1287_p5), 0.0  }
  0x10   : > { %s1604_s24 = scalar_lea.vmem %s1950_s0, %s1284_s20  ;;  %s1609_s27 = scalar_lea.vmem %s1952_s2, %s1286_s21  ;;  %260 = vst [vmem:[%s1953_s3] sm:$0x1] (!%p1287_p5), %v1557_v0  ;;  %261 = vst [vmem:[%s1954_s4] sm:$0x1] (!%p1287_p5), %v1557_v0 }
  0x15 PF: > { %v1493_v1 = vld [vmem:[%s1951_s1] sm:$0xff]   ;;  %v1494_v2 = vld [vmem:[%s1951_s1 + $0x8] sm:$0xff]   ;;  %v1495_v3 = vld [vmem:[%s1951_s1 + $0x10] sm:$0xff]  }
  0x16   : > { %1372 = vmatprep.subr.bf16.mxu0 %v1493_v1  ;;  %1452 = vmatprep.subr.bf16.mxu1 %v1493_v1  ;;  %v1496_v4 = vld [vmem:[%s1951_s1 + $0x18] sm:$0xff]   ;;  %v1501_v5 = vld [vmem:[%s1604_s24] sm:$0xff]   ;;  %v1498_v7 = vld [vmem:[%s1951_s1 + $0x28] sm:$0xff]  }
  0x17   : > { %1373 = vmatpush3.bf16.msra.mxu0 %v1493_v1  ;;  %1460 = vmatpush3.bf16.msra.mxu1 %v1493_v1  ;;  %v1497_v6 = vld [vmem:[%s1951_s1 + $0x20] sm:$0xff]   ;;  %v1499_v8 = vld [vmem:[%s1951_s1 + $0x30] sm:$0xff]   ;;  %v1500_v9 = vld [vmem:[%s1951_s1 + $0x38] sm:$0xff]  }
  0x18   : > { %1374 = vmatprep.subr.bf16.mxu0 %v1494_v2  ;;  %1453 = vmatprep.subr.bf16.mxu1 %v1494_v2  ;;  %v1517_v10 = vld [vmem:[%s1604_s24 + $0x80] sm:$0xff]   ;;  %v1502_v11 = vld [vmem:[%s1604_s24 + $0x8] sm:$0xff]   ;;  %v1503_v12 = vld [vmem:[%s1604_s24 + $0x10] sm:$0xff]  }
  0x19   : > { %1388 = vmatprep.mubr.bf16.mxu0 %v1501_v5  ;;  %1420 = vmatprep.mubr.bf16.mxu1 %v1517_v10  ;;  %v1518_v13 = vld [vmem:[%s1604_s24 + $0x88] sm:$0xff]   ;;  %v1519_v14 = vld [vmem:[%s1604_s24 + $0x90] sm:$0xff]   ;;  %v1504_v15 = vld [vmem:[%s1604_s24 + $0x18] sm:$0xff]  }
  0x1a   : > { %v1505_v16 = vld [vmem:[%s1604_s24 + $0x20] sm:$0xff]   ;;  %v1520_v17 = vld [vmem:[%s1604_s24 + $0x98] sm:$0xff]   ;;  %v1506_v19 = vld [vmem:[%s1604_s24 + $0x28] sm:$0xff]  }
  0x1b   : > { %1375 = vmatpush3.bf16.msra.mxu0 %v1494_v2  ;;  %1461 = vmatpush3.bf16.msra.mxu1 %v1494_v2  ;;  %v1521_v18 = vld [vmem:[%s1604_s24 + $0xa0] sm:$0xff]   ;;  %v1522_v20 = vld [vmem:[%s1604_s24 + $0xa8] sm:$0xff]   ;;  %v1507_v21 = vld [vmem:[%s1604_s24 + $0x30] sm:$0xff]  }
  0x1c   : > { %1376 = vmatprep.subr.bf16.mxu0 %v1495_v3  ;;  %1454 = vmatprep.subr.bf16.mxu1 %v1495_v3  ;;  %v1523_v22 = vld [vmem:[%s1604_s24 + $0xb0] sm:$0xff]   ;;  %v1508_v23 = vld [vmem:[%s1604_s24 + $0x38] sm:$0xff]   ;;  %v1509_v25 = vld [vmem:[%s1604_s24 + $0x40] sm:$0xff]  }
  0x1d   : > { %v1524_v24 = vld [vmem:[%s1604_s24 + $0xb8] sm:$0xff]   ;;  %v1525_v26 = vld [vmem:[%s1604_s24 + $0xc0] sm:$0xff]   ;;  %v1510_v27 = vld [vmem:[%s1604_s24 + $0x48] sm:$0xff]  }
  0x1e   : > { %v1526_v28 = vld [vmem:[%s1604_s24 + $0xc8] sm:$0xff]   ;;  %v1511_v29 = vld [vmem:[%s1604_s24 + $0x50] sm:$0xff]   ;;  %v1512_v31 = vld [vmem:[%s1604_s24 + $0x58] sm:$0xff]  }
  0x1f   : > { %1377 = vmatpush3.bf16.msra.mxu0 %v1495_v3  ;;  %1462 = vmatpush3.bf16.msra.mxu1 %v1495_v3  ;;  %v1527_v30 = vld [vmem:[%s1604_s24 + $0xd0] sm:$0xff]   ;;  %v1528_v32 = vld [vmem:[%s1604_s24 + $0xd8] sm:$0xff]   ;;  %v1513_v33 = vld [vmem:[%s1604_s24 + $0x60] sm:$0xff]  }
  0x20   : > { %1378 = vmatprep.subr.bf16.mxu0 %v1496_v4  ;;  %1455 = vmatprep.subr.bf16.mxu1 %v1496_v4  ;;  %v1529_v34 = vld [vmem:[%s1604_s24 + $0xe0] sm:$0xff]   ;;  %v1514_v35 = vld [vmem:[%s1604_s24 + $0x68] sm:$0xff]   ;;  %v1515_v37 = vld [vmem:[%s1604_s24 + $0x70] sm:$0xff]  }
  0x21   : > { %v1530_v36 = vld [vmem:[%s1604_s24 + $0xe8] sm:$0xff]   ;;  %v1531_v38 = vld [vmem:[%s1604_s24 + $0xf0] sm:$0xff]   ;;  %v1516_v39 = vld [vmem:[%s1604_s24 + $0x78] sm:$0xff]  }
  0x22   : > { %v1532_v40 = vld [vmem:[%s1604_s24 + $0xf8] sm:$0xff]  }
  0x23   : > { %1379 = vmatpush3.bf16.msra.mxu0 %v1496_v4  ;;  %1463 = vmatpush3.bf16.msra.mxu1 %v1496_v4 }
  0x24   : > { %1380 = vmatprep.subr.bf16.mxu0 %v1497_v6  ;;  %1456 = vmatprep.subr.bf16.mxu1 %v1497_v6 }
  0x27   : > { %1381 = vmatpush3.bf16.msra.mxu0 %v1497_v6  ;;  %1464 = vmatpush3.bf16.msra.mxu1 %v1497_v6 }
  0x28   : > { %1382 = vmatprep.subr.bf16.mxu0 %v1498_v7  ;;  %1457 = vmatprep.subr.bf16.mxu1 %v1498_v7 }
  0x2b   : > { %1383 = vmatpush3.bf16.msra.mxu0 %v1498_v7  ;;  %1465 = vmatpush3.bf16.msra.mxu1 %v1498_v7 }
  0x2c   : > { %1384 = vmatprep.subr.bf16.mxu0 %v1499_v8  ;;  %1458 = vmatprep.subr.bf16.mxu1 %v1499_v8 }
  0x2f   : > { %1385 = vmatpush3.bf16.msra.mxu0 %v1499_v8  ;;  %1466 = vmatpush3.bf16.msra.mxu1 %v1499_v8 }
  0x30   : > { %1386 = vmatprep.subr.bf16.mxu0 %v1500_v9  ;;  %1459 = vmatprep.subr.bf16.mxu1 %v1500_v9 }
  0x33   : > { %1387 = vmatpush3.bf16.msra.mxu0 %v1500_v9  ;;  %1467 = vmatpush3.bf16.msra.mxu1 %v1500_v9 }
  0x36   : > { %1389 = vmatmul.mubr.bf16.vlgmr.msra.gmra.mrb[0].mxu0 %v1502_v11  ;;  %1421 = vmatmul.mubr.bf16.vlgmr.msra.gmra.mrb[0].mxu1 %v1518_v13 }
  0x37   : > { %1392 = vmatprep.mubr.bf16.mxu0 %v1503_v12  ;;  %1424 = vmatprep.mubr.bf16.mxu1 %v1519_v14 }
  0x3e   : > { %1393 = vmatmul.mubr.bf16.gmra.mrb[4].mxu0 %v1504_v15  ;;  %1425 = vmatmul.mubr.bf16.gmra.mrb[4].mxu1 %v1520_v17 }
  0x3f   : > { %1396 = vmatprep.mubr.bf16.mxu0 %v1505_v16  ;;  %1428 = vmatprep.mubr.bf16.mxu1 %v1521_v18 }
  0x46   : > { %1397 = vmatmul.mubr.bf16.gmra.mrb[8].mxu0 %v1506_v19  ;;  %1429 = vmatmul.mubr.bf16.gmra.mrb[8].mxu1 %v1522_v20 }
  0x47   : > { %1400 = vmatprep.mubr.bf16.mxu0 %v1507_v21  ;;  %1432 = vmatprep.mubr.bf16.mxu1 %v1523_v22 }
  0x4e   : > { %1401 = vmatmul.mubr.bf16.gmra.mrb[12].mxu0 %v1508_v23  ;;  %1433 = vmatmul.mubr.bf16.gmra.mrb[12].mxu1 %v1524_v24 }
  0x4f   : > { %1404 = vmatprep.mubr.bf16.mxu0 %v1509_v25  ;;  %1436 = vmatprep.mubr.bf16.mxu1 %v1525_v26 }
  0x56   : > { %1405 = vmatmul.mubr.bf16.gmra.mrb[16].mxu0 %v1510_v27  ;;  %1437 = vmatmul.mubr.bf16.gmra.mrb[16].mxu1 %v1526_v28 }
  0x57   : > { %1408 = vmatprep.mubr.bf16.mxu0 %v1511_v29  ;;  %1440 = vmatprep.mubr.bf16.mxu1 %v1527_v30 }
  0x5e   : > { %1409 = vmatmul.mubr.bf16.gmra.mrb[20].mxu0 %v1512_v31  ;;  %1441 = vmatmul.mubr.bf16.gmra.mrb[20].mxu1 %v1528_v32 }
  0x5f   : > { %1412 = vmatprep.mubr.bf16.mxu0 %v1513_v33  ;;  %1444 = vmatprep.mubr.bf16.mxu1 %v1529_v34 }
  0x66   : > { %1413 = vmatmul.mubr.bf16.gmra.mrb[24].mxu0 %v1514_v35  ;;  %1445 = vmatmul.mubr.bf16.gmra.mrb[24].mxu1 %v1530_v36 }
  0x67   : > { %1416 = vmatprep.mubr.bf16.mxu0 %v1515_v37  ;;  %1448 = vmatprep.mubr.bf16.mxu1 %v1531_v38 }
  0x6e   : > { %1417 = vmatmul.mubr.bf16.gmra.mrb[28].mxu0 %v1516_v39  ;;  %1449 = vmatmul.mubr.bf16.gmra.mrb[28].mxu1 %v1532_v40 }
 0x109   : > { %v1390_v41 = vpop.f32.mrb[0].mxu0  ;;  %v1673_v42 = vpop.f32.mrb[0].mxu1 }
 0x10a   : > { %873 = vst [vmem:[%s1609_s27 + $0x10] sm:$0xff] %v1390_v41  ;;  %v616_v43 = vpop.f32.mrb[1].mxu0  ;;  %905 = vst [vmem:[%s1609_s27 + $0x110] sm:$0xff] %v1673_v42  ;;  %v1678_v44 = vpop.f32.mrb[1].mxu1  ;;  %v1010_v52 = vmul.f32 %v1390_v41, %v1390_v41 }
 0x10b   : > { %871 = vst [vmem:[%s1609_s27] sm:$0xff] %v616_v43  ;;  %v1391_v45 = vpop.f32.mrb[2].mxu0  ;;  %903 = vst [vmem:[%s1609_s27 + $0x100] sm:$0xff] %v1678_v44  ;;  %v1683_v46 = vpop.f32.mrb[2].mxu1  ;;  %v1008_v49 = vmul.f32 %v616_v43, %v616_v43 }
 0x10c   : > { %874 = vst [vmem:[%s1609_s27 + $0x18] sm:$0xff] %v1391_v45  ;;  %v619_v47 = vpop.f32.mrb[3].mxu0  ;;  %906 = vst [vmem:[%s1609_s27 + $0x118] sm:$0xff] %v1683_v46  ;;  %v1688_v48 = vpop.f32.mrb[3].mxu1  ;;  %v1011_v55 = vmul.f32 %v1391_v45, %v1391_v45 }
 0x10d   : > { %872 = vst [vmem:[%s1609_s27 + $0x8] sm:$0xff] %v619_v47  ;;  %v936_v50 = vadd.f32 %v619_v47, %v616_v43  ;;  %v1009_v51 = vmul.f32 %v619_v47, %v619_v47  ;;  %904 = vst [vmem:[%s1609_s27 + $0x108] sm:$0xff] %v1688_v48 }
 0x10f   : > { %v937_v53 = vadd.f32 %v1390_v41, %v936_v50  ;;  %v1072_v54 = vadd.f32 %v1009_v51, %v1008_v49 }
 0x111   : > { %v1073_v56 = vadd.f32 %v1072_v54, %v1010_v52  ;;  %v1394_v57 = vpop.f32.mrb[4].mxu0  ;;  %v938_v58 = vadd.f32 %v1391_v45, %v937_v53  ;;  %v1693_v59 = vpop.f32.mrb[4].mxu1 }
 0x112   : > { %877 = vst [vmem:[%s1609_s27 + $0x30] sm:$0xff] %v1394_v57  ;;  %v632_v60 = vpop.f32.mrb[5].mxu0  ;;  %909 = vst [vmem:[%s1609_s27 + $0x130] sm:$0xff] %v1693_v59  ;;  %v1698_v61 = vpop.f32.mrb[5].mxu1  ;;  %v1014_v8 = vmul.f32 %v1394_v57, %v1394_v57 }
 0x113   : > { %875 = vst [vmem:[%s1609_s27 + $0x20] sm:$0xff] %v632_v60  ;;  %v939_v62 = vadd.f32 %v938_v58, %v632_v60  ;;  %v1012_v63 = vmul.f32 %v632_v60, %v632_v60  ;;  %v1074_v0 = vadd.f32 %v1073_v56, %v1011_v55  ;;  %v1395_v1 = vpop.f32.mrb[6].mxu0  ;;  %907 = vst [vmem:[%s1609_s27 + $0x120] sm:$0xff] %v1698_v61  ;;  %v1703_v2 = vpop.f32.mrb[6].mxu1 }
 0x114   : > { %878 = vst [vmem:[%s1609_s27 + $0x38] sm:$0xff] %v1395_v1  ;;  %v635_v3 = vpop.f32.mrb[7].mxu0  ;;  %910 = vst [vmem:[%s1609_s27 + $0x138] sm:$0xff] %v1703_v2  ;;  %v1708_v4 = vpop.f32.mrb[7].mxu1  ;;  %v1015_v11 = vmul.f32 %v1395_v1, %v1395_v1 }
 0x115   : > { %v1075_v5 = vadd.f32 %v1074_v0, %v1012_v63  ;;  %876 = vst [vmem:[%s1609_s27 + $0x28] sm:$0xff] %v635_v3  ;;  %v940_v6 = vadd.f32 %v939_v62, %v635_v3  ;;  %v1013_v7 = vmul.f32 %v635_v3, %v635_v3  ;;  %908 = vst [vmem:[%s1609_s27 + $0x128] sm:$0xff] %v1708_v4 }
 0x117   : > { %v941_v9 = vadd.f32 %v1394_v57, %v940_v6  ;;  %v1076_v10 = vadd.f32 %v1075_v5, %v1013_v7 }
 0x119   : > { %v1077_v12 = vadd.f32 %v1076_v10, %v1014_v8  ;;  %v1398_v13 = vpop.f32.mrb[8].mxu0  ;;  %v942_v14 = vadd.f32 %v1395_v1, %v941_v9  ;;  %v1713_v15 = vpop.f32.mrb[8].mxu1 }
 0x11a   : > { %881 = vst [vmem:[%s1609_s27 + $0x50] sm:$0xff] %v1398_v13  ;;  %v648_v16 = vpop.f32.mrb[9].mxu0  ;;  %913 = vst [vmem:[%s1609_s27 + $0x150] sm:$0xff] %v1713_v15  ;;  %v1718_v17 = vpop.f32.mrb[9].mxu1  ;;  %v1018_v28 = vmul.f32 %v1398_v13, %v1398_v13 }
 0x11b   : > { %879 = vst [vmem:[%s1609_s27 + $0x40] sm:$0xff] %v648_v16  ;;  %v943_v18 = vadd.f32 %v942_v14, %v648_v16  ;;  %v1016_v19 = vmul.f32 %v648_v16, %v648_v16  ;;  %v1078_v20 = vadd.f32 %v1077_v12, %v1015_v11  ;;  %v1399_v21 = vpop.f32.mrb[10].mxu0  ;;  %911 = vst [vmem:[%s1609_s27 + $0x140] sm:$0xff] %v1718_v17  ;;  %v1723_v22 = vpop.f32.mrb[10].mxu1 }
 0x11c   : > { %882 = vst [vmem:[%s1609_s27 + $0x58] sm:$0xff] %v1399_v21  ;;  %v651_v23 = vpop.f32.mrb[11].mxu0  ;;  %914 = vst [vmem:[%s1609_s27 + $0x158] sm:$0xff] %v1723_v22  ;;  %v1728_v24 = vpop.f32.mrb[11].mxu1  ;;  %v1019_v31 = vmul.f32 %v1399_v21, %v1399_v21 }
 0x11d   : > { %v1079_v25 = vadd.f32 %v1078_v20, %v1016_v19  ;;  %880 = vst [vmem:[%s1609_s27 + $0x48] sm:$0xff] %v651_v23  ;;  %v944_v26 = vadd.f32 %v943_v18, %v651_v23  ;;  %v1017_v27 = vmul.f32 %v651_v23, %v651_v23  ;;  %912 = vst [vmem:[%s1609_s27 + $0x148] sm:$0xff] %v1728_v24 }
 0x11f   : > { %v945_v29 = vadd.f32 %v1398_v13, %v944_v26  ;;  %v1080_v30 = vadd.f32 %v1079_v25, %v1017_v27 }
 0x121   : > { %v1081_v32 = vadd.f32 %v1080_v30, %v1018_v28  ;;  %v1402_v33 = vpop.f32.mrb[12].mxu0  ;;  %v946_v34 = vadd.f32 %v1399_v21, %v945_v29  ;;  %v1733_v35 = vpop.f32.mrb[12].mxu1 }
 0x122   : > { %885 = vst [vmem:[%s1609_s27 + $0x70] sm:$0xff] %v1402_v33  ;;  %v664_v36 = vpop.f32.mrb[13].mxu0  ;;  %917 = vst [vmem:[%s1609_s27 + $0x170] sm:$0xff] %v1733_v35  ;;  %v1738_v37 = vpop.f32.mrb[13].mxu1  ;;  %v1022_v52 = vmul.f32 %v1402_v33, %v1402_v33 }
 0x123   : > { %883 = vst [vmem:[%s1609_s27 + $0x60] sm:$0xff] %v664_v36  ;;  %v947_v38 = vadd.f32 %v946_v34, %v664_v36  ;;  %v1020_v39 = vmul.f32 %v664_v36, %v664_v36  ;;  %v1082_v40 = vadd.f32 %v1081_v32, %v1019_v31  ;;  %v1403_v41 = vpop.f32.mrb[14].mxu0  ;;  %915 = vst [vmem:[%s1609_s27 + $0x160] sm:$0xff] %v1738_v37  ;;  %v1743_v43 = vpop.f32.mrb[14].mxu1 }
 0x124   : > { %886 = vst [vmem:[%s1609_s27 + $0x78] sm:$0xff] %v1403_v41  ;;  %v667_v45 = vpop.f32.mrb[15].mxu0  ;;  %918 = vst [vmem:[%s1609_s27 + $0x178] sm:$0xff] %v1743_v43  ;;  %v1748_v47 = vpop.f32.mrb[15].mxu1  ;;  %v1023_v55 = vmul.f32 %v1403_v41, %v1403_v41 }
 0x125   : > { %v1083_v49 = vadd.f32 %v1082_v40, %v1020_v39  ;;  %884 = vst [vmem:[%s1609_s27 + $0x68] sm:$0xff] %v667_v45  ;;  %v948_v50 = vadd.f32 %v947_v38, %v667_v45  ;;  %v1021_v51 = vmul.f32 %v667_v45, %v667_v45  ;;  %916 = vst [vmem:[%s1609_s27 + $0x168] sm:$0xff] %v1748_v47 }
 0x127   : > { %v949_v53 = vadd.f32 %v1402_v33, %v948_v50  ;;  %v1084_v54 = vadd.f32 %v1083_v49, %v1021_v51 }
 0x129   : > { %v1085_v56 = vadd.f32 %v1084_v54, %v1022_v52  ;;  %v1406_v57 = vpop.f32.mrb[16].mxu0  ;;  %v950_v58 = vadd.f32 %v1403_v41, %v949_v53  ;;  %v1753_v60 = vpop.f32.mrb[16].mxu1 }
 0x12a   : > { %889 = vst [vmem:[%s1609_s27 + $0x90] sm:$0xff] %v1406_v57  ;;  %v680_v62 = vpop.f32.mrb[17].mxu0  ;;  %921 = vst [vmem:[%s1609_s27 + $0x190] sm:$0xff] %v1753_v60  ;;  %v1758_v63 = vpop.f32.mrb[17].mxu1  ;;  %v1026_v12 = vmul.f32 %v1406_v57, %v1406_v57 }
 0x12b   : > { %887 = vst [vmem:[%s1609_s27 + $0x80] sm:$0xff] %v680_v62  ;;  %v951_v0 = vadd.f32 %v950_v58, %v680_v62  ;;  %v1024_v1 = vmul.f32 %v680_v62, %v680_v62  ;;  %v1086_v3 = vadd.f32 %v1085_v56, %v1023_v55  ;;  %v1407_v5 = vpop.f32.mrb[18].mxu0  ;;  %919 = vst [vmem:[%s1609_s27 + $0x180] sm:$0xff] %v1758_v63  ;;  %v1763_v6 = vpop.f32.mrb[18].mxu1 }
 0x12c   : > { %890 = vst [vmem:[%s1609_s27 + $0x98] sm:$0xff] %v1407_v5  ;;  %v683_v7 = vpop.f32.mrb[19].mxu0  ;;  %922 = vst [vmem:[%s1609_s27 + $0x198] sm:$0xff] %v1763_v6  ;;  %v1768_v8 = vpop.f32.mrb[19].mxu1  ;;  %v1027_v16 = vmul.f32 %v1407_v5, %v1407_v5 }
 0x12d   : > { %v1087_v9 = vadd.f32 %v1086_v3, %v1024_v1  ;;  %888 = vst [vmem:[%s1609_s27 + $0x88] sm:$0xff] %v683_v7  ;;  %v952_v10 = vadd.f32 %v951_v0, %v683_v7  ;;  %v1025_v11 = vmul.f32 %v683_v7, %v683_v7  ;;  %920 = vst [vmem:[%s1609_s27 + $0x188] sm:$0xff] %v1768_v8 }
 0x12f   : > { %v953_v13 = vadd.f32 %v1406_v57, %v952_v10  ;;  %v1088_v14 = vadd.f32 %v1087_v9, %v1025_v11 }
 0x131   : > { %v1089_v18 = vadd.f32 %v1088_v14, %v1026_v12  ;;  %v1410_v19 = vpop.f32.mrb[20].mxu0  ;;  %v954_v20 = vadd.f32 %v1407_v5, %v953_v13  ;;  %v1773_v21 = vpop.f32.mrb[20].mxu1 }
 0x132   : > { %893 = vst [vmem:[%s1609_s27 + $0xb0] sm:$0xff] %v1410_v19  ;;  %v696_v23 = vpop.f32.mrb[21].mxu0  ;;  %925 = vst [vmem:[%s1609_s27 + $0x1b0] sm:$0xff] %v1773_v21  ;;  %v1778_v25 = vpop.f32.mrb[21].mxu1  ;;  %v1030_v38 = vmul.f32 %v1410_v19, %v1410_v19 }
 0x133   : > { %891 = vst [vmem:[%s1609_s27 + $0xa0] sm:$0xff] %v696_v23  ;;  %v955_v26 = vadd.f32 %v954_v20, %v696_v23  ;;  %v1028_v27 = vmul.f32 %v696_v23, %v696_v23  ;;  %v1090_v28 = vadd.f32 %v1089_v18, %v1027_v16  ;;  %v1411_v29 = vpop.f32.mrb[22].mxu0  ;;  %923 = vst [vmem:[%s1609_s27 + $0x1a0] sm:$0xff] %v1778_v25  ;;  %v1783_v30 = vpop.f32.mrb[22].mxu1 }
 0x134   : > { %894 = vst [vmem:[%s1609_s27 + $0xb8] sm:$0xff] %v1411_v29  ;;  %v699_v31 = vpop.f32.mrb[23].mxu0  ;;  %926 = vst [vmem:[%s1609_s27 + $0x1b8] sm:$0xff] %v1783_v30  ;;  %v1788_v32 = vpop.f32.mrb[23].mxu1  ;;  %v1031_v41 = vmul.f32 %v1411_v29, %v1411_v29 }
 0x135   : > { %v1091_v33 = vadd.f32 %v1090_v28, %v1028_v27  ;;  %892 = vst [vmem:[%s1609_s27 + $0xa8] sm:$0xff] %v699_v31  ;;  %v956_v34 = vadd.f32 %v955_v26, %v699_v31  ;;  %v1029_v36 = vmul.f32 %v699_v31, %v699_v31  ;;  %924 = vst [vmem:[%s1609_s27 + $0x1a8] sm:$0xff] %v1788_v32 }
 0x137   : > { %v957_v39 = vadd.f32 %v1410_v19, %v956_v34  ;;  %v1092_v40 = vadd.f32 %v1091_v33, %v1029_v36 }
 0x139   : > { %v1093_v45 = vadd.f32 %v1092_v40, %v1030_v38  ;;  %v1414_v49 = vpop.f32.mrb[24].mxu0  ;;  %v958_v50 = vadd.f32 %v1411_v29, %v957_v39  ;;  %v1793_v51 = vpop.f32.mrb[24].mxu1 }
 0x13a   : > { %897 = vst [vmem:[%s1609_s27 + $0xd0] sm:$0xff] %v1414_v49  ;;  %v712_v52 = vpop.f32.mrb[25].mxu0  ;;  %929 = vst [vmem:[%s1609_s27 + $0x1d0] sm:$0xff] %v1793_v51  ;;  %v1798_v53 = vpop.f32.mrb[25].mxu1  ;;  %v1034_v7 = vmul.f32 %v1414_v49, %v1414_v49 }
 0x13b   : > { %895 = vst [vmem:[%s1609_s27 + $0xc0] sm:$0xff] %v712_v52  ;;  %v959_v54 = vadd.f32 %v958_v50, %v712_v52  ;;  %v1032_v55 = vmul.f32 %v712_v52, %v712_v52  ;;  %v1094_v56 = vadd.f32 %v1093_v45, %v1031_v41  ;;  %v1415_v57 = vpop.f32.mrb[26].mxu0  ;;  %927 = vst [vmem:[%s1609_s27 + $0x1c0] sm:$0xff] %v1798_v53  ;;  %v1803_v58 = vpop.f32.mrb[26].mxu1 }
 0x13c   : > { %898 = vst [vmem:[%s1609_s27 + $0xd8] sm:$0xff] %v1415_v57  ;;  %v715_v62 = vpop.f32.mrb[27].mxu0  ;;  %930 = vst [vmem:[%s1609_s27 + $0x1d8] sm:$0xff] %v1803_v58  ;;  %v1808_v0 = vpop.f32.mrb[27].mxu1  ;;  %v1035_v11 = vmul.f32 %v1415_v57, %v1415_v57  ;;  %v1040_v50 = vmul.f32 %v1678_v44, %v1678_v44 }
 0x13d   : > { %v1095_v1 = vadd.f32 %v1094_v56, %v1032_v55  ;;  %896 = vst [vmem:[%s1609_s27 + $0xc8] sm:$0xff] %v715_v62  ;;  %v960_v3 = vadd.f32 %v959_v54, %v715_v62  ;;  %v1033_v5 = vmul.f32 %v715_v62, %v715_v62  ;;  %928 = vst [vmem:[%s1609_s27 + $0x1c8] sm:$0xff] %v1808_v0 }
 0x13e   : > { %v1042_v62 = vmul.f32 %v1673_v42, %v1673_v42 }
 0x13f   : > { %v961_v9 = vadd.f32 %v1414_v49, %v960_v3  ;;  %v1096_v10 = vadd.f32 %v1095_v1, %v1033_v5  ;;  %v1043_v5 = vmul.f32 %v1683_v46, %v1683_v46 }
 0x141   : > { %v1097_v12 = vadd.f32 %v1096_v10, %v1034_v7  ;;  %v1418_v13 = vpop.f32.mrb[28].mxu0  ;;  %v962_v14 = vadd.f32 %v1415_v57, %v961_v9  ;;  %v1813_v16 = vpop.f32.mrb[28].mxu1  ;;  %v1041_v57 = vmul.f32 %v1688_v48, %v1688_v48 }
 0x142   : > { %901 = vst [vmem:[%s1609_s27 + $0xf0] sm:$0xff] %v1418_v13  ;;  %v728_v18 = vpop.f32.mrb[29].mxu0  ;;  %933 = vst [vmem:[%s1609_s27 + $0x1f0] sm:$0xff] %v1813_v16  ;;  %v1818_v19 = vpop.f32.mrb[29].mxu1  ;;  %v1038_v38 = vmul.f32 %v1418_v13, %v1418_v13 }
 0x143   : > { %899 = vst [vmem:[%s1609_s27 + $0xe0] sm:$0xff] %v728_v18  ;;  %v963_v20 = vadd.f32 %v962_v14, %v728_v18  ;;  %v1036_v23 = vmul.f32 %v728_v18, %v728_v18  ;;  %v1098_v26 = vadd.f32 %v1097_v12, %v1035_v11  ;;  %v1419_v27 = vpop.f32.mrb[30].mxu0  ;;  %931 = vst [vmem:[%s1609_s27 + $0x1e0] sm:$0xff] %v1818_v19  ;;  %v1823_v28 = vpop.f32.mrb[30].mxu1 }
 0x144   : > { %902 = vst [vmem:[%s1609_s27 + $0xf8] sm:$0xff] %v1419_v27  ;;  %v731_v29 = vpop.f32.mrb[31].mxu0  ;;  %934 = vst [vmem:[%s1609_s27 + $0x1f8] sm:$0xff] %v1823_v28  ;;  %v1828_v31 = vpop.f32.mrb[31].mxu1  ;;  %v1039_v41 = vmul.f32 %v1419_v27, %v1419_v27 }
 0x145   : > { %v1099_v33 = vadd.f32 %v1098_v26, %v1036_v23  ;;  %900 = vst [vmem:[%s1609_s27 + $0xe8] sm:$0xff] %v731_v29  ;;  %v964_v34 = vadd.f32 %v963_v20, %v731_v29  ;;  %v1037_v36 = vmul.f32 %v731_v29, %v731_v29  ;;  %932 = vst [vmem:[%s1609_s27 + $0x1e8] sm:$0xff] %v1828_v31 }
 0x147   : > { %v965_v39 = vadd.f32 %v1418_v13, %v964_v34  ;;  %v1100_v40 = vadd.f32 %v1099_v33, %v1037_v36  ;;  %v1045_v13 = vmul.f32 %v1708_v4, %v1708_v4  ;;  %v1049_v33 = vmul.f32 %v1728_v24, %v1728_v24 }
 0x149   : > { %v1101_v45 = vadd.f32 %v1100_v40, %v1038_v38  ;;  %v966_v49 = vadd.f32 %v1419_v27, %v965_v39 }
 0x14b   : > { %v967_v52 = vadd.f32 %v966_v49, %v1678_v44  ;;  %v1102_v54 = vadd.f32 %v1101_v45, %v1039_v41  ;;  %v1044_v44 = vmul.f32 %v1698_v61, %v1698_v61  ;;  %v1053_v49 = vmul.f32 %v1748_v47, %v1748_v47 }
 0x14d   : > { %v1103_v55 = vadd.f32 %v1102_v54, %v1040_v50  ;;  %v968_v56 = vadd.f32 %v967_v52, %v1688_v48 }
 0x14f   : > { %v969_v1 = vadd.f32 %v1673_v42, %v968_v56  ;;  %v1104_v3 = vadd.f32 %v1103_v55, %v1041_v57  ;;  %v1046_v42 = vmul.f32 %v1693_v59, %v1693_v59 }
 0x151   : > { %v1105_v7 = vadd.f32 %v1104_v3, %v1042_v62  ;;  %v970_v9 = vadd.f32 %v1683_v46, %v969_v1  ;;  %v1047_v46 = vmul.f32 %v1703_v2, %v1703_v2  ;;  %v1057_v1 = vmul.f32 %v1768_v8, %v1768_v8 }
 0x153   : > { %v971_v10 = vadd.f32 %v970_v9, %v1698_v61  ;;  %v1106_v11 = vadd.f32 %v1105_v7, %v1043_v5  ;;  %v1048_v61 = vmul.f32 %v1718_v17, %v1718_v17 }
 0x155   : > { %v1107_v12 = vadd.f32 %v1106_v11, %v1044_v44  ;;  %v972_v48 = vadd.f32 %v971_v10, %v1708_v4 }
 0x157   : > { %v973_v14 = vadd.f32 %v1693_v59, %v972_v48  ;;  %v1108_v18 = vadd.f32 %v1107_v12, %v1045_v13  ;;  %v1050_v59 = vmul.f32 %v1713_v15, %v1713_v15  ;;  %v1061_v12 = vmul.f32 %v1788_v32, %v1788_v32 }
 0x159   : > { %v1109_v20 = vadd.f32 %v1108_v18, %v1046_v42  ;;  %v974_v23 = vadd.f32 %v1703_v2, %v973_v14  ;;  %v1051_v2 = vmul.f32 %v1723_v22, %v1723_v22 }
 0x15b   : > { %v975_v26 = vadd.f32 %v974_v23, %v1718_v17  ;;  %v1110_v27 = vadd.f32 %v1109_v20, %v1047_v46  ;;  %v1052_v17 = vmul.f32 %v1738_v37, %v1738_v37  ;;  %v1065_v23 = vmul.f32 %v1808_v0, %v1808_v0 }
 0x15d   : > { %v1111_v29 = vadd.f32 %v1110_v27, %v1048_v61  ;;  %v976_v4 = vadd.f32 %v975_v26, %v1728_v24 }
 0x15f   : > { %v977_v34 = vadd.f32 %v1713_v15, %v976_v4  ;;  %v1112_v36 = vadd.f32 %v1111_v29, %v1049_v33  ;;  %v1054_v15 = vmul.f32 %v1733_v35, %v1733_v35 }
 0x161   : > { %v1113_v38 = vadd.f32 %v1112_v36, %v1050_v59  ;;  %v978_v39 = vadd.f32 %v1723_v22, %v977_v34  ;;  %v1055_v22 = vmul.f32 %v1743_v43, %v1743_v43  ;;  %v1069_v34 = vmul.f32 %v1828_v31, %v1828_v31 }
 0x163   : > { %v979_v40 = vadd.f32 %v978_v39, %v1738_v37  ;;  %v1114_v41 = vadd.f32 %v1113_v38, %v1051_v2  ;;  %v1056_v37 = vmul.f32 %v1758_v63, %v1758_v63 }
 0x165   : > { %v1115_v45 = vadd.f32 %v1114_v41, %v1052_v17  ;;  %v980_v24 = vadd.f32 %v979_v40, %v1748_v47 }
 0x167   : > { %v981_v50 = vadd.f32 %v1733_v35, %v980_v24  ;;  %v1116_v52 = vadd.f32 %v1115_v45, %v1053_v49  ;;  %v1058_v35 = vmul.f32 %v1753_v60, %v1753_v60 }
 0x169   : > { %v1117_v54 = vadd.f32 %v1116_v52, %v1054_v15  ;;  %v982_v55 = vadd.f32 %v1743_v43, %v981_v50  ;;  %v1059_v43 = vmul.f32 %v1763_v6, %v1763_v6 }
 0x16b   : > { %v983_v56 = vadd.f32 %v982_v55, %v1758_v63  ;;  %v1118_v57 = vadd.f32 %v1117_v54, %v1055_v22  ;;  %v1060_v63 = vmul.f32 %v1778_v25, %v1778_v25 }
 0x16d   : > { %v1119_v62 = vadd.f32 %v1118_v57, %v1056_v37  ;;  %v984_v47 = vadd.f32 %v983_v56, %v1768_v8 }
 0x16f   : > { %v985_v3 = vadd.f32 %v1753_v60, %v984_v47  ;;  %v1120_v5 = vadd.f32 %v1119_v62, %v1057_v1  ;;  %v1062_v60 = vmul.f32 %v1773_v21, %v1773_v21 }
 0x171   : > { %v1121_v7 = vadd.f32 %v1120_v5, %v1058_v35  ;;  %v986_v9 = vadd.f32 %v1763_v6, %v985_v3  ;;  %v1063_v6 = vmul.f32 %v1783_v30, %v1783_v30 }
 0x173   : > { %v987_v44 = vadd.f32 %v986_v9, %v1778_v25  ;;  %v1122_v10 = vadd.f32 %v1121_v7, %v1059_v43  ;;  %v1064_v25 = vmul.f32 %v1798_v53, %v1798_v53 }
 0x175   : > { %v1123_v11 = vadd.f32 %v1122_v10, %v1060_v63  ;;  %v988_v8 = vadd.f32 %v987_v44, %v1788_v32 }
 0x177   : > { %v989_v48 = vadd.f32 %v1773_v21, %v988_v8  ;;  %v1124_v13 = vadd.f32 %v1123_v11, %v1061_v12  ;;  %v1066_v21 = vmul.f32 %v1793_v51, %v1793_v51 }
 0x179   : > { %v1125_v42 = vadd.f32 %v1124_v13, %v1062_v60  ;;  %v990_v14 = vadd.f32 %v1783_v30, %v989_v48  ;;  %v1067_v30 = vmul.f32 %v1803_v58, %v1803_v58 }
 0x17b   : > { %v991_v18 = vadd.f32 %v990_v14, %v1798_v53  ;;  %v1126_v46 = vadd.f32 %v1125_v42, %v1063_v6  ;;  %v1068_v53 = vmul.f32 %v1818_v19, %v1818_v19 }
 0x17d   : > { %v1127_v20 = vadd.f32 %v1126_v46, %v1064_v25  ;;  %v992_v32 = vadd.f32 %v991_v18, %v1808_v0 }
 0x17f   : > { %v993_v61 = vadd.f32 %v1793_v51, %v992_v32  ;;  %v1128_v26 = vadd.f32 %v1127_v20, %v1065_v23  ;;  %v1070_v51 = vmul.f32 %v1813_v16, %v1813_v16 }
 0x181   : > { %v1129_v27 = vadd.f32 %v1128_v26, %v1066_v21  ;;  %v994_v29 = vadd.f32 %v1803_v58, %v993_v61  ;;  %v1071_v58 = vmul.f32 %v1823_v28, %v1823_v28 }
 0x183   : > { %v995_v4 = vadd.f32 %v994_v29, %v1818_v19  ;;  %v1130_v33 = vadd.f32 %v1129_v27, %v1067_v30 }
 0x185   : > { %v1131_v59 = vadd.f32 %v1130_v33, %v1068_v53  ;;  %v996_v0 = vadd.f32 %v995_v4, %v1828_v31 }
 0x187   : > { %v997_v36 = vadd.f32 %v1813_v16, %v996_v0  ;;  %v1132_v2 = vadd.f32 %v1131_v59, %v1069_v34  ;;  %v935_v16 = vld [vmem:[%s1953_s3] sm:$0x1] }
 0x189   : > { %v998_v38 = vadd.f32 %v1823_v28, %v997_v36  ;;  %v1133_v39 = vadd.f32 %v1132_v2, %v1070_v51  ;;  %v1007_v28 = vld [vmem:[%s1954_s4] sm:$0x1] }
 0x18b   : > { %v999_v19 = vrot.slane %v998_v38, 4  ;;  %v1134_v17 = vadd.f32 %v1133_v39, %v1071_v58 }
 0x18d   : > { %v1000_v40 = vadd.f32 %v999_v19, %v998_v38  ;;  %v1135_v41 = vrot.slane %v1134_v17, 4 }
 0x18f   : > { %v1001_v45 = vrot.slane %v1000_v40, 2  ;;  %v1136_v24 = vadd.f32 %v1135_v41, %v1134_v17 }
 0x191   : > { %v1002_v49 = vadd.f32 %v1001_v45, %v1000_v40  ;;  %v1137_v31 = vrot.slane %v1136_v24, 2 }
 0x193   : > { %v1003_v15 = vrot.slane %v1002_v49, 1  ;;  %v1138_v50 = vadd.f32 %v1137_v31, %v1136_v24 }
 0x195   : > { %v1004_v52 = vadd.f32 %v1003_v15, %v1002_v49  ;;  %v1139_v22 = vrot.slane %v1138_v50, 1 }
 0x197   : > { %v1005_v54 = vadd.f32 %v1004_v52, %v935_v16  ;;  %v1140_v55 = vadd.f32 %v1139_v22, %v1138_v50 }
 0x199   : > { %1006 = vst [vmem:[%s1953_s3] sm:$0x1] %v1005_v54  ;;  %v1141_v37 = vadd.f32 %v1140_v55, %v1007_v28 }
 0x19b   : > { %1142 = vst [vmem:[%s1954_s4] sm:$0x1] %v1141_v37 }
 0x19c PF: > { %s15_s17 = sadd.s32 1, %s1555_s17   ;;  %s1955_s15 = smov %s1551_s16 }
 0x19d   : > { %p12_p6 = scmp.ge.s32.totalorder %s15_s17, 4   ;;  %s1956_s16 = smov %s1958_s18 }
 0x19f   :  { %14 = sbr.rel (!%p12_p6) target bundleno = 2 (0x2), region = 89 }

// kernel: _lambda_.6
= control target key start
LH: loop header
LB: loop body
LE: loop exit
PB: predicated region body
PF: predicated region fallthrough
CT: control target
= control target key end

     0   :  { %v667_v24 = vmov 0.0   ;;  %s957_s1 = inlined_call_operand.vmem [shape: bf16[128,128], index: 1, kind: input, shape index: {}]   ;;  %s958_s0 = inlined_call_operand.vmem [shape: bf16[256,128], index: 0, kind: input, shape index: {}]   ;;  %s959_s3 = inlined_call_operand.vmem [shape: f32[1,128], index: 3, kind: output, shape index: {1}]   ;;  %s960_s4 = inlined_call_operand.vmem [shape: f32[1,128], index: 4, kind: output, shape index: {2}]   ;;  %s961_s2 = inlined_call_operand.vmem [shape: f32[256,128], index: 2, kind: output, shape index: {0}]  }
   0x1   :  { %v643_v0 = vld [vmem:[%s957_s1] sm:$0xff]   ;;  %v644_v1 = vld [vmem:[%s957_s1 + $0x8] sm:$0xff]   ;;  %v645_v2 = vld [vmem:[%s957_s1 + $0x10] sm:$0xff]   ;;  %19 = vst [vmem:[%s959_s3] sm:$0x1] %v667_v24 }
   0x2   :  { %578 = vmatprep.subr.bf16.mxu0 %v643_v0  ;;  %626 = vmatprep.subr.bf16.mxu1 %v643_v0  ;;  %v646_v3 = vld [vmem:[%s957_s1 + $0x18] sm:$0xff]   ;;  %v651_v4 = vld [vmem:[%s958_s0] sm:$0xff]   ;;  %v648_v6 = vld [vmem:[%s957_s1 + $0x28] sm:$0xff]   ;;  %20 = vst [vmem:[%s960_s4] sm:$0x1] %v667_v24 }
   0x3   :  { %579 = vmatpush3.bf16.msra.mxu0 %v643_v0  ;;  %634 = vmatpush3.bf16.msra.mxu1 %v643_v0  ;;  %v647_v5 = vld [vmem:[%s957_s1 + $0x20] sm:$0xff]   ;;  %v649_v8 = vld [vmem:[%s957_s1 + $0x30] sm:$0xff]   ;;  %v650_v9 = vld [vmem:[%s957_s1 + $0x38] sm:$0xff]  }
   0x4   :  { %580 = vmatprep.subr.bf16.mxu0 %v644_v1  ;;  %627 = vmatprep.subr.bf16.mxu1 %v644_v1  ;;  %v659_v7 = vld [vmem:[%s958_s0 + $0x40] sm:$0xff]   ;;  %v652_v10 = vld [vmem:[%s958_s0 + $0x8] sm:$0xff]   ;;  %v653_v12 = vld [vmem:[%s958_s0 + $0x10] sm:$0xff]  }
   0x5   :  { %594 = vmatprep.mubr.bf16.mxu0 %v651_v4  ;;  %610 = vmatprep.mubr.bf16.mxu1 %v659_v7  ;;  %v660_v11 = vld [vmem:[%s958_s0 + $0x48] sm:$0xff]   ;;  %v661_v13 = vld [vmem:[%s958_s0 + $0x50] sm:$0xff]   ;;  %v654_v14 = vld [vmem:[%s958_s0 + $0x18] sm:$0xff]  }
   0x6   :  { %v662_v15 = vld [vmem:[%s958_s0 + $0x58] sm:$0xff]   ;;  %v655_v16 = vld [vmem:[%s958_s0 + $0x20] sm:$0xff]   ;;  %v656_v18 = vld [vmem:[%s958_s0 + $0x28] sm:$0xff]  }
   0x7   :  { %581 = vmatpush3.bf16.msra.mxu0 %v644_v1  ;;  %635 = vmatpush3.bf16.msra.mxu1 %v644_v1  ;;  %v663_v17 = vld [vmem:[%s958_s0 + $0x60] sm:$0xff]   ;;  %v664_v19 = vld [vmem:[%s958_s0 + $0x68] sm:$0xff]   ;;  %v657_v20 = vld [vmem:[%s958_s0 + $0x30] sm:$0xff]  }
   0x8   :  { %582 = vmatprep.subr.bf16.mxu0 %v645_v2  ;;  %628 = vmatprep.subr.bf16.mxu1 %v645_v2  ;;  %v665_v21 = vld [vmem:[%s958_s0 + $0x70] sm:$0xff]   ;;  %v658_v22 = vld [vmem:[%s958_s0 + $0x38] sm:$0xff]  }
   0x9   :  { %v666_v23 = vld [vmem:[%s958_s0 + $0x78] sm:$0xff]  }
   0xb   :  { %583 = vmatpush3.bf16.msra.mxu0 %v645_v2  ;;  %636 = vmatpush3.bf16.msra.mxu1 %v645_v2 }
   0xc   :  { %584 = vmatprep.subr.bf16.mxu0 %v646_v3  ;;  %629 = vmatprep.subr.bf16.mxu1 %v646_v3 }
   0xf   :  { %585 = vmatpush3.bf16.msra.mxu0 %v646_v3  ;;  %637 = vmatpush3.bf16.msra.mxu1 %v646_v3 }
  0x10   :  { %586 = vmatprep.subr.bf16.mxu0 %v647_v5  ;;  %630 = vmatprep.subr.bf16.mxu1 %v647_v5 }
  0x13   :  { %587 = vmatpush3.bf16.msra.mxu0 %v647_v5  ;;  %638 = vmatpush3.bf16.msra.mxu1 %v647_v5 }
  0x14   :  { %588 = vmatprep.subr.bf16.mxu0 %v648_v6  ;;  %631 = vmatprep.subr.bf16.mxu1 %v648_v6 }
  0x17   :  { %589 = vmatpush3.bf16.msra.mxu0 %v648_v6  ;;  %639 = vmatpush3.bf16.msra.mxu1 %v648_v6 }
  0x18   :  { %590 = vmatprep.subr.bf16.mxu0 %v649_v8  ;;  %632 = vmatprep.subr.bf16.mxu1 %v649_v8 }
  0x1b   :  { %591 = vmatpush3.bf16.msra.mxu0 %v649_v8  ;;  %640 = vmatpush3.bf16.msra.mxu1 %v649_v8 }
  0x1c   :  { %592 = vmatprep.subr.bf16.mxu0 %v650_v9  ;;  %633 = vmatprep.subr.bf16.mxu1 %v650_v9 }
  0x1f   :  { %593 = vmatpush3.bf16.msra.mxu0 %v650_v9  ;;  %641 = vmatpush3.bf16.msra.mxu1 %v650_v9 }
  0x22   :  { %595 = vmatmul.mubr.bf16.vlgmr.msra.gmra.mrb[0].mxu0 %v652_v10  ;;  %611 = vmatmul.mubr.bf16.vlgmr.msra.gmra.mrb[0].mxu1 %v660_v11 }
  0x23   :  { %598 = vmatprep.mubr.bf16.mxu0 %v653_v12  ;;  %614 = vmatprep.mubr.bf16.mxu1 %v661_v13 }
  0x2a   :  { %599 = vmatmul.mubr.bf16.gmra.mrb[4].mxu0 %v654_v14  ;;  %615 = vmatmul.mubr.bf16.gmra.mrb[4].mxu1 %v662_v15 }
  0x2b   :  { %602 = vmatprep.mubr.bf16.mxu0 %v655_v16  ;;  %618 = vmatprep.mubr.bf16.mxu1 %v663_v17 }
  0x32   :  { %603 = vmatmul.mubr.bf16.gmra.mrb[8].mxu0 %v656_v18  ;;  %619 = vmatmul.mubr.bf16.gmra.mrb[8].mxu1 %v664_v19 }
  0x33   :  { %606 = vmatprep.mubr.bf16.mxu0 %v657_v20  ;;  %622 = vmatprep.mubr.bf16.mxu1 %v665_v21 }
  0x3a   :  { %607 = vmatmul.mubr.bf16.gmra.mrb[12].mxu0 %v658_v22  ;;  %623 = vmatmul.mubr.bf16.gmra.mrb[12].mxu1 %v666_v23 }
  0xf5   :  { %v596_v25 = vpop.f32.mrb[0].mxu0  ;;  %v771_v26 = vpop.f32.mrb[0].mxu1 }
  0xf6   :  { %376 = vst [vmem:[%s961_s2 + $0x10] sm:$0xff] %v596_v25  ;;  %v247_v27 = vpop.f32.mrb[1].mxu0  ;;  %392 = vst [vmem:[%s961_s2 + $0x90] sm:$0xff] %v771_v26  ;;  %v780_v28 = vpop.f32.mrb[1].mxu1  ;;  %v449_v36 = vmul.f32 %v596_v25, %v596_v25 }
  0xf7   :  { %374 = vst [vmem:[%s961_s2] sm:$0xff] %v247_v27  ;;  %v597_v29 = vpop.f32.mrb[2].mxu0  ;;  %390 = vst [vmem:[%s961_s2 + $0x80] sm:$0xff] %v780_v28  ;;  %v789_v30 = vpop.f32.mrb[2].mxu1  ;;  %v447_v33 = vmul.f32 %v247_v27, %v247_v27 }
  0xf8   :  { %377 = vst [vmem:[%s961_s2 + $0x18] sm:$0xff] %v597_v29  ;;  %v250_v31 = vpop.f32.mrb[3].mxu0  ;;  %393 = vst [vmem:[%s961_s2 + $0x98] sm:$0xff] %v789_v30  ;;  %v798_v32 = vpop.f32.mrb[3].mxu1  ;;  %v450_v39 = vmul.f32 %v597_v29, %v597_v29 }
  0xf9   :  { %375 = vst [vmem:[%s961_s2 + $0x8] sm:$0xff] %v250_v31  ;;  %v407_v34 = vadd.f32 %v250_v31, %v247_v27  ;;  %v448_v35 = vmul.f32 %v250_v31, %v250_v31  ;;  %391 = vst [vmem:[%s961_s2 + $0x88] sm:$0xff] %v798_v32 }
  0xfb   :  { %v408_v37 = vadd.f32 %v596_v25, %v407_v34  ;;  %v479_v38 = vadd.f32 %v448_v35, %v447_v33 }
  0xfd   :  { %v480_v40 = vadd.f32 %v479_v38, %v449_v36  ;;  %v600_v41 = vpop.f32.mrb[4].mxu0  ;;  %v409_v42 = vadd.f32 %v597_v29, %v408_v37  ;;  %v807_v43 = vpop.f32.mrb[4].mxu1 }
  0xfe   :  { %380 = vst [vmem:[%s961_s2 + $0x30] sm:$0xff] %v600_v41  ;;  %v263_v44 = vpop.f32.mrb[5].mxu0  ;;  %396 = vst [vmem:[%s961_s2 + $0xb0] sm:$0xff] %v807_v43  ;;  %v816_v45 = vpop.f32.mrb[5].mxu1  ;;  %v453_v56 = vmul.f32 %v600_v41, %v600_v41 }
  0xff   :  { %378 = vst [vmem:[%s961_s2 + $0x20] sm:$0xff] %v263_v44  ;;  %v410_v46 = vadd.f32 %v409_v42, %v263_v44  ;;  %v451_v47 = vmul.f32 %v263_v44, %v263_v44  ;;  %v481_v48 = vadd.f32 %v480_v40, %v450_v39  ;;  %v601_v49 = vpop.f32.mrb[6].mxu0  ;;  %394 = vst [vmem:[%s961_s2 + $0xa0] sm:$0xff] %v816_v45  ;;  %v825_v50 = vpop.f32.mrb[6].mxu1 }
 0x100   :  { %381 = vst [vmem:[%s961_s2 + $0x38] sm:$0xff] %v601_v49  ;;  %v266_v51 = vpop.f32.mrb[7].mxu0  ;;  %397 = vst [vmem:[%s961_s2 + $0xb8] sm:$0xff] %v825_v50  ;;  %v834_v52 = vpop.f32.mrb[7].mxu1  ;;  %v454_v59 = vmul.f32 %v601_v49, %v601_v49  ;;  %v463_v42 = vmul.f32 %v780_v28, %v780_v28 }
 0x101   :  { %v482_v53 = vadd.f32 %v481_v48, %v451_v47  ;;  %379 = vst [vmem:[%s961_s2 + $0x28] sm:$0xff] %v266_v51  ;;  %v411_v54 = vadd.f32 %v410_v46, %v266_v51  ;;  %v452_v55 = vmul.f32 %v266_v51, %v266_v51  ;;  %395 = vst [vmem:[%s961_s2 + $0xa8] sm:$0xff] %v834_v52 }
 0x102   :  { %v465_v51 = vmul.f32 %v771_v26, %v771_v26 }
 0x103   :  { %v412_v57 = vadd.f32 %v600_v41, %v411_v54  ;;  %v483_v58 = vadd.f32 %v482_v53, %v452_v55  ;;  %v466_v55 = vmul.f32 %v789_v30, %v789_v30 }
 0x105   :  { %v484_v60 = vadd.f32 %v483_v58, %v453_v56  ;;  %v604_v61 = vpop.f32.mrb[8].mxu0  ;;  %v413_v62 = vadd.f32 %v601_v49, %v412_v57  ;;  %v843_v63 = vpop.f32.mrb[8].mxu1  ;;  %v464_v49 = vmul.f32 %v798_v32, %v798_v32 }
 0x106   :  { %384 = vst [vmem:[%s961_s2 + $0x50] sm:$0xff] %v604_v61  ;;  %v279_v0 = vpop.f32.mrb[9].mxu0  ;;  %400 = vst [vmem:[%s961_s2 + $0xd0] sm:$0xff] %v843_v63  ;;  %v852_v1 = vpop.f32.mrb[9].mxu1  ;;  %v457_v12 = vmul.f32 %v604_v61, %v604_v61 }
 0x107   :  { %382 = vst [vmem:[%s961_s2 + $0x40] sm:$0xff] %v279_v0  ;;  %v414_v2 = vadd.f32 %v413_v62, %v279_v0  ;;  %v455_v3 = vmul.f32 %v279_v0, %v279_v0  ;;  %v485_v4 = vadd.f32 %v484_v60, %v454_v59  ;;  %v605_v5 = vpop.f32.mrb[10].mxu0  ;;  %398 = vst [vmem:[%s961_s2 + $0xc0] sm:$0xff] %v852_v1  ;;  %v861_v6 = vpop.f32.mrb[10].mxu1 }
 0x108   :  { %385 = vst [vmem:[%s961_s2 + $0x58] sm:$0xff] %v605_v5  ;;  %v282_v7 = vpop.f32.mrb[11].mxu0  ;;  %401 = vst [vmem:[%s961_s2 + $0xd8] sm:$0xff] %v861_v6  ;;  %v870_v8 = vpop.f32.mrb[11].mxu1  ;;  %v458_v15 = vmul.f32 %v605_v5, %v605_v5 }
 0x109   :  { %v486_v9 = vadd.f32 %v485_v4, %v455_v3  ;;  %383 = vst [vmem:[%s961_s2 + $0x48] sm:$0xff] %v282_v7  ;;  %v415_v10 = vadd.f32 %v414_v2, %v282_v7  ;;  %v456_v11 = vmul.f32 %v282_v7, %v282_v7  ;;  %399 = vst [vmem:[%s961_s2 + $0xc8] sm:$0xff] %v870_v8 }
 0x10b   :  { %v416_v13 = vadd.f32 %v604_v61, %v415_v10  ;;  %v487_v14 = vadd.f32 %v486_v9, %v456_v11  ;;  %v468_v61 = vmul.f32 %v834_v52, %v834_v52  ;;  %v472_v9 = vmul.f32 %v870_v8, %v870_v8 }
 0x10d   :  { %v488_v16 = vadd.f32 %v487_v14, %v457_v12  ;;  %v608_v17 = vpop.f32.mrb[12].mxu0  ;;  %v417_v18 = vadd.f32 %v605_v5, %v416_v13  ;;  %v879_v19 = vpop.f32.mrb[12].mxu1 }
 0x10e   :  { %388 = vst [vmem:[%s961_s2 + $0x70] sm:$0xff] %v608_v17  ;;  %v295_v20 = vpop.f32.mrb[13].mxu0  ;;  %404 = vst [vmem:[%s961_s2 + $0xf0] sm:$0xff] %v879_v19  ;;  %v359_v21 = vpop.f32.mrb[13].mxu1  ;;  %v461_v36 = vmul.f32 %v608_v17, %v608_v17 }
 0x10f   :  { %386 = vst [vmem:[%s961_s2 + $0x60] sm:$0xff] %v295_v20  ;;  %v418_v22 = vadd.f32 %v417_v18, %v295_v20  ;;  %v459_v23 = vmul.f32 %v295_v20, %v295_v20  ;;  %v489_v24 = vadd.f32 %v488_v16, %v458_v15  ;;  %v609_v25 = vpop.f32.mrb[14].mxu0  ;;  %402 = vst [vmem:[%s961_s2 + $0xe0] sm:$0xff] %v359_v21  ;;  %v625_v27 = vpop.f32.mrb[14].mxu1 }
 0x110   :  { %389 = vst [vmem:[%s961_s2 + $0x78] sm:$0xff] %v609_v25  ;;  %v298_v29 = vpop.f32.mrb[15].mxu0  ;;  %405 = vst [vmem:[%s961_s2 + $0xf8] sm:$0xff] %v625_v27  ;;  %v362_v31 = vpop.f32.mrb[15].mxu1  ;;  %v462_v39 = vmul.f32 %v609_v25, %v609_v25 }
 0x111   :  { %v490_v33 = vadd.f32 %v489_v24, %v459_v23  ;;  %387 = vst [vmem:[%s961_s2 + $0x68] sm:$0xff] %v298_v29  ;;  %v419_v34 = vadd.f32 %v418_v22, %v298_v29  ;;  %v460_v35 = vmul.f32 %v298_v29, %v298_v29  ;;  %403 = vst [vmem:[%s961_s2 + $0xe8] sm:$0xff] %v362_v31 }
 0x112   :  { %v476_v18 = vmul.f32 %v362_v31, %v362_v31 }
 0x113   :  { %v420_v37 = vadd.f32 %v608_v17, %v419_v34  ;;  %v491_v38 = vadd.f32 %v490_v33, %v460_v35 }
 0x115   :  { %v492_v40 = vadd.f32 %v491_v38, %v461_v36  ;;  %v421_v41 = vadd.f32 %v609_v25, %v420_v37 }
 0x117   :  { %v422_v44 = vadd.f32 %v421_v41, %v780_v28  ;;  %v493_v46 = vadd.f32 %v492_v40, %v462_v39  ;;  %v467_v28 = vmul.f32 %v816_v45, %v816_v45 }
 0x119   :  { %v494_v47 = vadd.f32 %v493_v46, %v463_v42  ;;  %v423_v48 = vadd.f32 %v422_v44, %v798_v32 }
 0x11b   :  { %v424_v53 = vadd.f32 %v771_v26, %v423_v48  ;;  %v495_v54 = vadd.f32 %v494_v47, %v464_v49  ;;  %v469_v26 = vmul.f32 %v807_v43, %v807_v43 }
 0x11d   :  { %v496_v56 = vadd.f32 %v495_v54, %v465_v51  ;;  %v425_v57 = vadd.f32 %v789_v30, %v424_v53  ;;  %v470_v30 = vmul.f32 %v825_v50, %v825_v50 }
 0x11f   :  { %v426_v58 = vadd.f32 %v425_v57, %v816_v45  ;;  %v497_v59 = vadd.f32 %v496_v56, %v466_v55  ;;  %v471_v45 = vmul.f32 %v852_v1, %v852_v1 }
 0x121   :  { %v498_v60 = vadd.f32 %v497_v59, %v467_v28  ;;  %v427_v32 = vadd.f32 %v426_v58, %v834_v52 }
 0x123   :  { %v428_v62 = vadd.f32 %v807_v43, %v427_v32  ;;  %v499_v0 = vadd.f32 %v498_v60, %v468_v61  ;;  %v473_v43 = vmul.f32 %v843_v63, %v843_v63 }
 0x125   :  { %v500_v2 = vadd.f32 %v499_v0, %v469_v26  ;;  %v429_v3 = vadd.f32 %v825_v50, %v428_v62  ;;  %v474_v50 = vmul.f32 %v861_v6, %v861_v6 }
 0x127   :  { %v430_v4 = vadd.f32 %v429_v3, %v852_v1  ;;  %v501_v5 = vadd.f32 %v500_v2, %v470_v30  ;;  %v475_v1 = vmul.f32 %v359_v21, %v359_v21 }
 0x129   :  { %v502_v7 = vadd.f32 %v501_v5, %v471_v45  ;;  %v431_v52 = vadd.f32 %v430_v4, %v870_v8  ;;  %v477_v8 = vmul.f32 %v879_v19, %v879_v19 }
 0x12b   :  { %v432_v10 = vadd.f32 %v843_v63, %v431_v52  ;;  %v503_v11 = vadd.f32 %v502_v7, %v472_v9  ;;  %v478_v63 = vmul.f32 %v625_v27, %v625_v27 }
 0x12d   :  { %v504_v12 = vadd.f32 %v503_v11, %v473_v43  ;;  %v433_v13 = vadd.f32 %v861_v6, %v432_v10 }
 0x12f   :  { %v434_v14 = vadd.f32 %v433_v13, %v359_v21  ;;  %v505_v15 = vadd.f32 %v504_v12, %v474_v50 }
 0x131   :  { %v506_v16 = vadd.f32 %v505_v15, %v475_v1  ;;  %v435_v17 = vadd.f32 %v434_v14, %v362_v31  ;;  %v406_v31 = vld [vmem:[%s959_s3] sm:$0x1] }
 0x133   :  { %v436_v20 = vadd.f32 %v879_v19, %v435_v17  ;;  %v507_v22 = vadd.f32 %v506_v16, %v476_v18 }
 0x135   :  { %v437_v23 = vadd.f32 %v625_v27, %v436_v20  ;;  %v508_v24 = vadd.f32 %v507_v22, %v477_v8  ;;  %v446_v27 = vld [vmem:[%s960_s4] sm:$0x1] }
 0x137   :  { %v438_v25 = vrot.slane %v437_v23, 4  ;;  %v509_v29 = vadd.f32 %v508_v24, %v478_v63 }
 0x139   :  { %v439_v33 = vadd.f32 %v438_v25, %v437_v23  ;;  %v510_v34 = vrot.slane %v509_v29, 4 }
 0x13b   :  { %v440_v6 = vrot.slane %v439_v33, 2  ;;  %v511_v35 = vadd.f32 %v510_v34, %v509_v29 }
 0x13d   :  { %v441_v21 = vadd.f32 %v440_v6, %v439_v33  ;;  %v512_v36 = vrot.slane %v511_v35, 2 }
 0x13f   :  { %v442_v37 = vrot.slane %v441_v21, 1  ;;  %v513_v38 = vadd.f32 %v512_v36, %v511_v35 }
 0x141   :  { %v443_v39 = vadd.f32 %v442_v37, %v441_v21  ;;  %v514_v19 = vrot.slane %v513_v38, 1 }
 0x143   :  { %v444_v40 = vadd.f32 %v443_v39, %v406_v31  ;;  %v515_v41 = vadd.f32 %v514_v19, %v513_v38 }
 0x145   :  { %445 = vst [vmem:[%s959_s3] sm:$0x1] %v444_v40  ;;  %v516_v42 = vadd.f32 %v515_v41, %v446_v27 }
 0x147   :  { %517 = vst [vmem:[%s960_s4] sm:$0x1] %v516_v42 }

// kernel: _lambda_.7
= control target key start
LH: loop header
LB: loop body
LE: loop exit
PB: predicated region body
PF: predicated region fallthrough
CT: control target
= control target key end

     0   :  { %v68_v8 = vlaneseq  ;;  %s473_s0 = inlined_call_operand.vmem [shape: f32[256,128], index: 0, kind: input, shape index: {}]   ;;  %s474_s1 = inlined_call_operand.vmem [shape: f32[1,128], index: 1, kind: input, shape index: {}]   ;;  %s475_s2 = inlined_call_operand.vmem [shape: f32[1,128], index: 2, kind: input, shape index: {}]   ;;  %s476_s3 = inlined_call_operand.vmem [shape: f32[1,128], index: 3, kind: input, shape index: {}]   ;;  %s477_s4 = inlined_call_operand.vmem [shape: f32[1,128], index: 4, kind: input, shape index: {}]   ;;  %s478_s5 = inlined_call_operand.hbm [shape: f32[256,128], index: 5, kind: output, shape index: {}]  }
   0x1   :  { %v21_v0 = vld [vmem:[%s474_s1] sm:$0x1] }
   0x2   :  { %v23_v1 = vld [vmem:[%s475_s2] sm:$0x1]  ;;  %v22_v2 = vmul.f32 0.00390625, %v21_v0 }
   0x3   :  { %v24_v3 = vmul.f32 0.00390625, %v23_v1 }
   0x4   :  { %v25_v4 = vmul.f32 %v22_v2, %v22_v2 }
   0x6   :  { %v26_v5 = vsub.f32 %v24_v3, %v25_v4 }
   0x8   :  { %v27_v6 = vmax.f32 %v26_v5, 0.0 }
   0xa   :  { %v29_v7 = vadd.f32 1e-05, %v27_v6 }
   0xc   :  { %226 = vrsqrt.f32 %v29_v7 }
   0xd   :  { %10 = vsyncpa [#allocation3], 0  ;;  %v69_v9 = vshrl.u32 %v68_v8, 7  ;;  %v28_v10 = vld [vmem:[%s476_s3] sm:$0x1]  ;;  %v36_v16 = vld [vmem:[%s473_s0 + $0x8] sm:$0xff] }
   0xe   :  { %v32_v14 = vld [vmem:[%s477_s4] sm:$0x1]  ;;  %v37_v17 = vld [vmem:[%s473_s0 + $0x10] sm:$0xff]  ;;  %v38_v18 = vld [vmem:[%s473_s0 + $0x18] sm:$0xff] }
   0xf   :  { %v70_v11 = vsub.s32 0, %v69_v9  ;;  %v35_v15 = vld [vmem:[%s473_s0] sm:$0xff]  ;;  %v40_v22 = vld [vmem:[%s473_s0 + $0x28] sm:$0xff]  ;;  %v41_v23 = vld [vmem:[%s473_s0 + $0x30] sm:$0xff] }
  0x10   :  { %v39_v19 = vld [vmem:[%s473_s0 + $0x20] sm:$0xff]  ;;  %v42_v24 = vld [vmem:[%s473_s0 + $0x38] sm:$0xff]  ;;  %v44_v26 = vld [vmem:[%s473_s0 + $0x48] sm:$0xff] }
  0x11   :  { %v43_v25 = vld [vmem:[%s473_s0 + $0x40] sm:$0xff]  ;;  %v45_v27 = vld [vmem:[%s473_s0 + $0x50] sm:$0xff]  ;;  %v46_v32 = vld [vmem:[%s473_s0 + $0x58] sm:$0xff] }
  0x12   :  { %v47_v33 = vld [vmem:[%s473_s0 + $0x60] sm:$0xff]  ;;  %v48_v34 = vld [vmem:[%s473_s0 + $0x68] sm:$0xff]  ;;  %v49_v59 = vld [vmem:[%s473_s0 + $0x70] sm:$0xff] }
  0x13   :  { %v50_v60 = vld [vmem:[%s473_s0 + $0x78] sm:$0xff]  ;;  %v51_v5 = vld [vmem:[%s473_s0 + $0x80] sm:$0xff] }
  0x16   :  { %v227_v12 = vpop.eup %226 }
  0x17   :  { %v31_v13 = vmul.f32 %v227_v12, %v28_v10  ;;  %v52_v10 = vld [vmem:[%s473_s0 + $0x88] sm:$0xff]  ;;  %v54_v12 = vld [vmem:[%s473_s0 + $0x98] sm:$0xff] }
  0x19   :  { %v33_v20 = vmul.f32 %v31_v13, %v22_v2  ;;  %v312_v21 = vrot.slane %v31_v13, %v70_v11 }
  0x1b   :  { %v34_v28 = vsub.f32 %v32_v14, %v33_v20  ;;  %v73_v29 = vmul.f32 %v312_v21, %v35_v15  ;;  %v74_v30 = vmul.f32 %v312_v21, %v36_v16  ;;  %v75_v31 = vmul.f32 %v312_v21, %v37_v17  ;;  %v55_v17 = vld [vmem:[%s473_s0 + $0xa0] sm:$0xff] }
  0x1c   :  { %v76_v35 = vmul.f32 %v312_v21, %v38_v18  ;;  %v77_v36 = vmul.f32 %v312_v21, %v39_v19  ;;  %v78_v37 = vmul.f32 %v312_v21, %v40_v22  ;;  %v79_v38 = vmul.f32 %v312_v21, %v41_v23  ;;  %v56_v18 = vld [vmem:[%s473_s0 + $0xa8] sm:$0xff] }
  0x1d   :  { %v348_v39 = vrot.slane %v34_v28, %v70_v11  ;;  %v80_v40 = vmul.f32 %v312_v21, %v42_v24  ;;  %v81_v41 = vmul.f32 %v312_v21, %v43_v25  ;;  %v82_v42 = vmul.f32 %v312_v21, %v44_v26  ;;  %v53_v11 = vld [vmem:[%s473_s0 + $0x90] sm:$0xff] }
  0x1e   :  { %v83_v43 = vmul.f32 %v312_v21, %v45_v27  ;;  %v84_v44 = vmul.f32 %v312_v21, %v46_v32  ;;  %v85_v45 = vmul.f32 %v312_v21, %v47_v33  ;;  %v86_v46 = vmul.f32 %v312_v21, %v48_v34  ;;  %v57_v28 = vld [vmem:[%s473_s0 + $0xb0] sm:$0xff] }
  0x1f   :  { %v111_v47 = vadd.f32 %v348_v39, %v73_v29  ;;  %v112_v48 = vadd.f32 %v348_v39, %v74_v30  ;;  %v113_v49 = vadd.f32 %v348_v39, %v75_v31  ;;  %v114_v50 = vadd.f32 %v348_v39, %v76_v35  ;;  %v58_v29 = vld [vmem:[%s473_s0 + $0xb8] sm:$0xff] }
  0x20   :  { %v115_v51 = vadd.f32 %v348_v39, %v77_v36  ;;  %v116_v52 = vadd.f32 %v348_v39, %v78_v37  ;;  %v117_v53 = vadd.f32 %v348_v39, %v79_v38  ;;  %v118_v54 = vadd.f32 %v348_v39, %v80_v40  ;;  %v59_v38 = vld [vmem:[%s473_s0 + $0xc0] sm:$0xff] }
  0x21   :  { %v143_v55 = vmax.f32 %v111_v47, 0.0  ;;  %v144_v56 = vmax.f32 %v112_v48, 0.0  ;;  %v145_v57 = vmax.f32 %v113_v49, 0.0  ;;  %v146_v58 = vmax.f32 %v114_v50, 0.0 }
  0x22   :  { %v147_v61 = vmax.f32 %v115_v51, 0.0  ;;  %v148_v62 = vmax.f32 %v116_v52, 0.0  ;;  %v149_v63 = vmax.f32 %v117_v53, 0.0  ;;  %v150_v0 = vmax.f32 %v118_v54, 0.0  ;;  %v63_v51 = vld [vmem:[%s473_s0 + $0xe0] sm:$0xff]  ;;  %v64_v52 = vld [vmem:[%s473_s0 + $0xe8] sm:$0xff] }
  0x23   :  { %175 = vst [vmem:[#allocation2] sm:$0xff] %v143_v55  ;;  %176 = vst [vmem:[#allocation2 + $0x8] sm:$0xff] %v144_v56  ;;  %v119_v1 = vadd.f32 %v348_v39, %v81_v41  ;;  %v120_v2 = vadd.f32 %v348_v39, %v82_v42  ;;  %v121_v3 = vadd.f32 %v348_v39, %v83_v43 }
  0x24   :  { %177 = vst [vmem:[#allocation2 + $0x10] sm:$0xff] %v145_v57  ;;  %178 = vst [vmem:[#allocation2 + $0x18] sm:$0xff] %v146_v58  ;;  %v122_v4 = vadd.f32 %v348_v39, %v84_v44  ;;  %v123_v6 = vadd.f32 %v348_v39, %v85_v45  ;;  %v124_v7 = vadd.f32 %v348_v39, %v86_v46  ;;  %v60_v44 = vld [vmem:[%s473_s0 + $0xc8] sm:$0xff]  ;;  %v61_v45 = vld [vmem:[%s473_s0 + $0xd0] sm:$0xff] }
  0x25   :  { %179 = vst [vmem:[#allocation2 + $0x20] sm:$0xff] %v147_v61  ;;  %180 = vst [vmem:[#allocation2 + $0x28] sm:$0xff] %v148_v62  ;;  %v87_v8 = vmul.f32 %v312_v21, %v49_v59  ;;  %v88_v9 = vmul.f32 %v312_v21, %v50_v60  ;;  %v151_v13 = vmax.f32 %v119_v1, 0.0  ;;  %v152_v14 = vmax.f32 %v120_v2, 0.0  ;;  %v62_v46 = vld [vmem:[%s473_s0 + $0xd8] sm:$0xff]  ;;  %v65_v61 = vld [vmem:[%s473_s0 + $0xf0] sm:$0xff] }
  0x26   :  { %181 = vst [vmem:[#allocation2 + $0x30] sm:$0xff] %v149_v63  ;;  %182 = vst [vmem:[#allocation2 + $0x38] sm:$0xff] %v150_v0  ;;  %v153_v15 = vmax.f32 %v121_v3, 0.0  ;;  %v154_v16 = vmax.f32 %v122_v4, 0.0  ;;  %v155_v19 = vmax.f32 %v123_v6, 0.0  ;;  %v156_v20 = vmax.f32 %v124_v7, 0.0 }
  0x27   :  { %v125_v22 = vadd.f32 %v348_v39, %v87_v8  ;;  %v126_v23 = vadd.f32 %v348_v39, %v88_v9  ;;  %183 = vst [vmem:[#allocation2 + $0x40] sm:$0xff] %v151_v13  ;;  %184 = vst [vmem:[#allocation2 + $0x48] sm:$0xff] %v152_v14  ;;  %v89_v24 = vmul.f32 %v312_v21, %v51_v5  ;;  %v66_v62 = vld [vmem:[%s473_s0 + $0xf8] sm:$0xff]  ;;  %s252_s0 = smov [#allocation2]  }
  0x28   :  { %185 = vst [vmem:[#allocation2 + $0x50] sm:$0xff] %v153_v15  ;;  %186 = vst [vmem:[#allocation2 + $0x58] sm:$0xff] %v154_v16  ;;  %v90_v25 = vmul.f32 %v312_v21, %v52_v10  ;;  %v91_v26 = vmul.f32 %v312_v21, %v53_v11  ;;  %v92_v27 = vmul.f32 %v312_v21, %v54_v12  ;;  %s212_s3 = sshll.u32 %s252_s0, 4  ;;  %s213_s3 = int_to_ptr.vmem [resolvable:$true] %s212_s3 }
  0x29   :  { %187 = vst [vmem:[#allocation2 + $0x60] sm:$0xff] %v155_v19  ;;  %188 = vst [vmem:[#allocation2 + $0x68] sm:$0xff] %v156_v20  ;;  %v157_v30 = vmax.f32 %v125_v22, 0.0  ;;  %v158_v31 = vmax.f32 %v126_v23, 0.0  ;;  %v93_v32 = vmul.f32 %v312_v21, %v55_v17  ;;  %v94_v33 = vmul.f32 %v312_v21, %v56_v18  ;;  %s228_s30 = scalar_lea.vmem %s213_s3, 4096  ;;  %p233_p1 = scmp.lt.s32.totalorder %s213_s3, %s213_s3 }
  0x2a   :  { %v127_v34 = vadd.f32 %v348_v39, %v89_v24  ;;  %v128_v35 = vadd.f32 %v348_v39, %v90_v25  ;;  %v129_v36 = vadd.f32 %v348_v39, %v91_v26  ;;  %v130_v37 = vadd.f32 %v348_v39, %v92_v27  ;;  %p229_p0 = scmp.ne.s32.totalorder %s213_s3, %s228_s30  ;;  %p234_p2 = scmp.lt.s32.totalorder %s228_s30, %s228_s30 }
  0x2b   :  { %189 = vst [vmem:[#allocation2 + $0x70] sm:$0xff] %v157_v30  ;;  %190 = vst [vmem:[#allocation2 + $0x78] sm:$0xff] %v158_v31  ;;  %v131_v40 = vadd.f32 %v348_v39, %v93_v32  ;;  %v132_v41 = vadd.f32 %v348_v39, %v94_v33  ;;  %v95_v42 = vmul.f32 %v312_v21, %v57_v28 }
  0x2c   :  { %v96_v43 = vmul.f32 %v312_v21, %v58_v29  ;;  %v159_v47 = vmax.f32 %v127_v34, 0.0  ;;  %v160_v48 = vmax.f32 %v128_v35, 0.0  ;;  %v161_v49 = vmax.f32 %v129_v36, 0.0  ;;  %p235_p3 = por %p234_p2, %p233_p1 }
  0x2d   :  { %v162_v50 = vmax.f32 %v130_v37, 0.0  ;;  %v163_v53 = vmax.f32 %v131_v40, 0.0  ;;  %v164_v54 = vmax.f32 %v132_v41, 0.0  ;;  %v133_v55 = vadd.f32 %v348_v39, %v95_v42 }
  0x2e   :  { %v134_v56 = vadd.f32 %v348_v39, %v96_v43  ;;  %191 = vst [vmem:[#allocation2 + $0x80] sm:$0xff] %v159_v47  ;;  %192 = vst [vmem:[#allocation2 + $0x88] sm:$0xff] %v160_v48  ;;  %v97_v57 = vmul.f32 %v312_v21, %v59_v38  ;;  %v98_v58 = vmul.f32 %v312_v21, %v60_v44  ;;  %p236_p4 = pnand %p235_p3, %p229_p0 }
  0x2f   :  { %193 = vst [vmem:[#allocation2 + $0x90] sm:$0xff] %v161_v49  ;;  %194 = vst [vmem:[#allocation2 + $0x98] sm:$0xff] %v162_v50  ;;  %v99_v59 = vmul.f32 %v312_v21, %v61_v45  ;;  %v100_v60 = vmul.f32 %v312_v21, %v62_v46  ;;  %v165_v63 = vmax.f32 %v133_v55, 0.0  ;;  %v101_v1 = vmul.f32 %v312_v21, %v63_v51 }
  0x30   :  { %195 = vst [vmem:[#allocation2 + $0xa0] sm:$0xff] %v163_v53  ;;  %196 = vst [vmem:[#allocation2 + $0xa8] sm:$0xff] %v164_v54  ;;  %v166_v0 = vmax.f32 %v134_v56, 0.0  ;;  %v102_v2 = vmul.f32 %v312_v21, %v64_v52  ;;  %v135_v3 = vadd.f32 %v348_v39, %v97_v57  ;;  %v136_v4 = vadd.f32 %v348_v39, %v98_v58 }
  0x31   :  { %v137_v5 = vadd.f32 %v348_v39, %v99_v59  ;;  %v138_v6 = vadd.f32 %v348_v39, %v100_v60  ;;  %197 = vst [vmem:[#allocation2 + $0xb0] sm:$0xff] %v165_v63  ;;  %v139_v7 = vadd.f32 %v348_v39, %v101_v1  ;;  %v103_v9 = vmul.f32 %v312_v21, %v65_v61 }
  0x32   :  { %198 = vst [vmem:[#allocation2 + $0xb8] sm:$0xff] %v166_v0  ;;  %v140_v8 = vadd.f32 %v348_v39, %v102_v2  ;;  %v104_v10 = vmul.f32 %v312_v21, %v66_v62  ;;  %v167_v11 = vmax.f32 %v135_v3, 0.0  ;;  %v168_v12 = vmax.f32 %v136_v4, 0.0 }
  0x33   :  { %v169_v13 = vmax.f32 %v137_v5, 0.0  ;;  %v170_v14 = vmax.f32 %v138_v6, 0.0  ;;  %v171_v15 = vmax.f32 %v139_v7, 0.0  ;;  %v141_v17 = vadd.f32 %v348_v39, %v103_v9 }
  0x34   :  { %v172_v16 = vmax.f32 %v140_v8, 0.0  ;;  %v142_v18 = vadd.f32 %v348_v39, %v104_v10  ;;  %199 = vst [vmem:[#allocation2 + $0xc0] sm:$0xff] %v167_v11  ;;  %200 = vst [vmem:[#allocation2 + $0xc8] sm:$0xff] %v168_v12 }
  0x35   :  { %201 = vst [vmem:[#allocation2 + $0xd0] sm:$0xff] %v169_v13  ;;  %202 = vst [vmem:[#allocation2 + $0xd8] sm:$0xff] %v170_v14  ;;  %v173_v19 = vmax.f32 %v141_v17, 0.0 }
  0x36   :  { %203 = vst [vmem:[#allocation2 + $0xe0] sm:$0xff] %v171_v15  ;;  %204 = vst [vmem:[#allocation2 + $0xe8] sm:$0xff] %v172_v16  ;;  %v174_v21 = vmax.f32 %v142_v18, 0.0 }
  0x37   :  { %205 = vst [vmem:[#allocation2 + $0xf0] sm:$0xff] %v173_v19 }
  0x38   :  { %206 = vst [vmem:[#allocation2 + $0xf8] sm:$0xff] %v174_v21 }
  0x39   :  { %239 = shalt.err (!%p236_p4)
}
  0x3a   :  { %s240_s4 = scalar_lea.hbm %s478_s5, 4096 }
  0x3b   :  { %p241_p5 = scmp.ne.s32.totalorder %s478_s5, %s240_s4  ;;  %p244_p6 = scmp.lt.u32.totalorder %s240_s4, %s478_s5 }
  0x3d   :  { %p246_p7 = pnand %p244_p6, %p241_p5 }
  0x3f   :  { %249 = shalt.err (!%p246_p7)
}
  0x40   :  { %s253_s12 = smov 128   ;;  %s254_s13 = smov 8  }
  0x41   :  { %218 = dma.vmem_to_hbm [thread:$0]  %s213_s3, 4096, %s478_s5, [#allocation3], %s253_s12, %s253_s12, %s254_s13  }
  0x42   :  { %250 = dma.done.wait [#allocation3], 4096  }
  0x43   :  { %251 = vsyncadd [#allocation3], 4294963200 }
  0x44   :  { %222 = vsyncpa [#allocation3], 1 }

</bundles_post_ra>
